<compile_context>
chip_gen: v7x
topology: tpu7x:2x2x1
jax: 0.10.0
libtpu: 0.0.40
codegen_flags: <defaults>
</compile_context>

<pallas_src>
import jax
import jax.numpy as jnp
from jax.experimental import pallas as pl
from jax.experimental.pallas import tpu as pltpu


def _mul_conv1x1_kernel(x_ref, s_ref, w_ref, o_ref):
    # x_ref: [Cin, M]    f32   (one sample, native NCHW slab)
    # s_ref: [1, Cin]    f32   (per-sample per-channel scale, lane-dense)
    # w_ref: [Cout, Cin] bf16  (1x1 conv weight, pre-cast at param prep)
    # o_ref: [Cout, M]
    #
    # Fold the scale into the weight rows:  W @ diag(s) @ x == (W * s_row) @ x.
    # bf16 multiply (sublane-broadcast of the lane-dense scale row); both MXU
    # operands end up bf16 with an f32 accumulator.
    ws = w_ref[...] * s_ref[...].astype(jnp.bfloat16)       # [Cout, Cin] bf16
    xb = x_ref[...].astype(jnp.bfloat16)                     # [Cin, M]   bf16
    o_ref[...] = jnp.dot(
        ws, xb, preferred_element_type=jnp.float32
    ).astype(o_ref.dtype)


def mul_conv2d_1x1(x_nchw, scale_nc11, weight_bf16_oc):
    """Equivalent of: Conv2d(Cin, Cout, 1, bias=False)(x_nchw * scale_nc11).

    `weight_bf16_oc` is the conv weight reshaped to [Cout, Cin]; pass it in
    bf16 (cast once at parameter-prep time).  Any other dtype is cast here as
    a fallback.
    """
    N, Cin, H, W = x_nchw.shape
    Cout = weight_bf16_oc.shape[0]
    M = H * W

    # Free, contiguous reshapes only — no transposes, no extra HBM passes.
    x3 = x_nchw.reshape(N, Cin, M)           # [N, Cin, M]
    s3 = scale_nc11.reshape(N, 1, Cin)       # [N, 1, Cin]  lane-dense scale row
    w2 = weight_bf16_oc
    if w2.dtype != jnp.bfloat16:             # prefer casting at param prep
        w2 = w2.astype(jnp.bfloat16)

    itemsize_x = jnp.dtype(x_nchw.dtype).itemsize
    cost = pl.CostEstimate(
        flops=2 * N * Cout * Cin * M,
        transcendentals=0,
        bytes_accessed=(
            N * Cin * M * itemsize_x            # x
            + N * Cin * itemsize_x              # scale
            + Cout * Cin * 2                    # bf16 weight
            + N * Cout * M * itemsize_x         # output
        ),
    )

    out3 = pl.pallas_call(
        _mul_conv1x1_kernel,
        out_shape=jax.ShapeDtypeStruct((N, Cout, M), x_nchw.dtype),
        grid=(N,),
        in_specs=[
            pl.BlockSpec((None, Cin, M), lambda n: (n, 0, 0)),   # x slab
            pl.BlockSpec((None, 1, Cin), lambda n: (n, 0, 0)),   # scale row
            pl.BlockSpec((Cout, Cin), lambda n: (0, 0)),         # full weight
        ],
        out_specs=pl.BlockSpec((None, Cout, M), lambda n: (n, 0, 0)),
        compiler_params=pltpu.CompilerParams(
            dimension_semantics=("parallel",),
        ),
        cost_estimate=cost,
    )(x3, s3, w2)

    # Free reshape back to NCHW.
    return out3.reshape(N, Cout, H, W)


if __name__ == "__main__":
    # Shapes implied by the module's forward.
    N, Cin, H, W = 1, 1344, 14, 14
    Cout = 224

    key = jax.random.PRNGKey(0)
    kx, ks, kw = jax.random.split(key, 3)

    x446 = jax.random.normal(kx, (N, Cin, H, W), dtype=jnp.float32)
    x451 = jax.random.normal(ks, (N, Cin, 1, 1), dtype=jnp.float32)
    # Deterministic synthetic conv weight (not a checkpoint).
    conv_w = jax.random.normal(kw, (Cout, Cin, 1, 1), dtype=jnp.float32) * 0.02

    # Parameter prep: reshape + cast the static weight to bf16 once.
    conv_w_bf16 = conv_w.reshape(Cout, Cin).astype(jnp.bfloat16)

    out = mul_conv2d_1x1(x446, x451, conv_w_bf16)
    out = jax.block_until_ready(out)

    # Plain-JAX f32 reference (same math via XLA).
    ref = jnp.einsum("nchw,oc->nohw", x446 * x451, conv_w.reshape(Cout, Cin))
    assert out.shape == (N, Cout, H, W)
    err = jnp.max(jnp.abs(out - ref))
    # bf16 matmul operands (and bf16 scale-folded weight) with f32 accumulation
    # vs an f32 reference — intentional precision trade, well inside 5e-2.
    assert err < 5e-2, f"max abs err {err}"

    print("KERNEL_OK")
</pallas_src>

<mosaic_0001>
module attributes {stable_mosaic.version = 11 : i64} {
  func.func @_mul_conv1x1_kernel(%arg0: i32, %arg1: memref<1x1344x196xf32, #tpu.memory_space<vmem>>, %arg2: memref<1x1x1344xf32, #tpu.memory_space<vmem>>, %arg3: memref<224x1344xbf16, #tpu.memory_space<vmem>>, %arg4: memref<1x224x196xf32, #tpu.memory_space<vmem>>) attributes {dimension_semantics = [#tpu.dimension_semantics<parallel>], iteration_bounds = array<i64: 1>, scalar_prefetch = 0 : i64, scratch_operands = 0 : i64, tpu.core_type = #tpu.core_type<tc>, window_params = [{transform_indices = @transform_0, window_bounds = array<i64: 1, 1344, 196>}, {transform_indices = @transform_1, window_bounds = array<i64: 1, 1, 1344>}, {pipeline_mode = #tpu.pipeline_mode<synchronous>, transform_indices = @transform_2, window_bounds = array<i64: 224, 1344>}, {transform_indices = @transform_3, window_bounds = array<i64: 1, 224, 196>}]} {
    %c0 = arith.constant 0 : index
    %c0_0 = arith.constant 0 : index
    %0 = vector.load %arg3[%c0, %c0_0] : memref<224x1344xbf16, #tpu.memory_space<vmem>>, vector<224x1344xbf16>
    %c0_1 = arith.constant 0 : index
    %c0_2 = arith.constant 0 : index
    %c0_3 = arith.constant 0 : index
    %1 = vector.load %arg2[%c0_1, %c0_2, %c0_3] : memref<1x1x1344xf32, #tpu.memory_space<vmem>>, vector<1x1x1344xf32>
    %2 = vector.shape_cast %1 : vector<1x1x1344xf32> to vector<1x1344xf32>
    %3 = arith.truncf %2 : vector<1x1344xf32> to vector<1x1344xbf16>
    %4 = vector.broadcast %3 : vector<1x1344xbf16> to vector<224x1344xbf16>
    %5 = arith.mulf %0, %4 : vector<224x1344xbf16>
    %c0_4 = arith.constant 0 : index
    %c0_5 = arith.constant 0 : index
    %c0_6 = arith.constant 0 : index
    %6 = vector.load %arg1[%c0_4, %c0_5, %c0_6] : memref<1x1344x196xf32, #tpu.memory_space<vmem>>, vector<1x1344x196xf32>
    %7 = vector.shape_cast %6 : vector<1x1344x196xf32> to vector<1344x196xf32>
    %8 = arith.truncf %7 : vector<1344x196xf32> to vector<1344x196xbf16>
    %cst = arith.constant dense<0.000000e+00> : vector<224x196xf32>
    %9 = tpu.matmul %5, %8, %cst {dimension_numbers = #tpu.dot_dimension_numbers<[1], [0], [0], [1], [0, 0, 1, 1], [], []>} : vector<224x1344xbf16>, vector<1344x196xbf16>, vector<224x196xf32> -> vector<224x196xf32>
    %c0_7 = arith.constant 0 : index
    %c0_8 = arith.constant 0 : index
    %c0_9 = arith.constant 0 : index
    %10 = vector.load %arg4[%c0_7, %c0_8, %c0_9] : memref<1x224x196xf32, #tpu.memory_space<vmem>>, vector<1x224x196xf32>
    %11 = vector.shape_cast %10 : vector<1x224x196xf32> to vector<224x196xf32>
    %12 = vector.shape_cast %9 : vector<224x196xf32> to vector<1x224x196xf32>
    tpu.vector_store %arg4[%c0_7, %c0_8, %c0_9], %12 {strides = array<i32>} : memref<1x224x196xf32, #tpu.memory_space<vmem>>, vector<1x224x196xf32>,
    return
  }
  func.func @transform_0(%arg0: i32) -> (i32, i32, i32) {
    %c0_i32 = arith.constant 0 : i32
    %c0_i32_0 = arith.constant 0 : i32
    %c0_i32_1 = arith.constant 0 : i32
    return %arg0, %c0_i32, %c0_i32_0 : i32, i32, i32
  }
  func.func @transform_1(%arg0: i32) -> (i32, i32, i32) {
    %c0_i32 = arith.constant 0 : i32
    %c0_i32_0 = arith.constant 0 : i32
    %c0_i32_1 = arith.constant 0 : i32
    return %arg0, %c0_i32, %c0_i32_0 : i32, i32, i32
  }
  func.func @transform_2(%arg0: i32) -> (i32, i32) {
    %c0_i32 = arith.constant 0 : i32
    %c0_i32_0 = arith.constant 0 : i32
    %c0_i32_1 = arith.constant 0 : i32
    return %c0_i32, %c0_i32_0 : i32, i32
  }
  func.func @transform_3(%arg0: i32) -> (i32, i32, i32) {
    %c0_i32 = arith.constant 0 : i32
    %c0_i32_0 = arith.constant 0 : i32
    %c0_i32_1 = arith.constant 0 : i32
    return %arg0, %c0_i32, %c0_i32_0 : i32, i32, i32
  }
}

</mosaic_0001>

<bundles_post_ra>
// kernel: tpu_custom_call.1
= control target key start
LH: loop header
LB: loop body
LE: loop exit
PB: predicated region body
PF: predicated region fallthrough
CT: control target
= control target key end

     0   :  { %vm1806_vm0 = vcmask 523264   ;;  %vm2888_vm1 = vcmask 556032   ;;  %s5573_s0 = inlined_call_operand.vmem [shape: f32[1,1344,196], index: 0, kind: input, shape index: {}]   ;;  %s5574_s1 = inlined_call_operand.vmem [shape: f32[1,1,1344], index: 1, kind: input, shape index: {}]   ;;  %s5575_s2 = inlined_call_operand.vmem [shape: bf16[224,1344], index: 2, kind: input, shape index: {}]   ;;  %s5576_s3 = inlined_call_operand.vmem [shape: f32[1,224,196], index: 3, kind: output, shape index: {}]  }
   0x1   :  { %v533_v0 = vld [vmem:[%s5573_s0 + $0x8] sm:$0xff]  ;;  %v535_v1 = vld [vmem:[%s5573_s0 + $0x18] sm:$0xff]  ;;  %v532_v5 = vld [vmem:[%s5573_s0] sm:$0xff] }
   0x2   :  { %v725_v2 = vld [vmem:[%s5573_s0 + $0x608] sm:$0xff]  ;;  %v869_v3 = vpack.c.bf16 %v535_v1, %v533_v0  ;;  %v727_v4 = vld [vmem:[%s5573_s0 + $0x618] sm:$0xff]  ;;  %v534_v6 = vld [vmem:[%s5573_s0 + $0x10] sm:$0xff] }
   0x3   :  { %v965_v7 = vpack.c.bf16 %v727_v4, %v725_v2  ;;  %v868_v8 = vpack.c.bf16 %v534_v6, %v532_v5  ;;  %v724_v9 = vld [vmem:[%s5573_s0 + $0x600] sm:$0xff]  ;;  %v726_v10 = vld [vmem:[%s5573_s0 + $0x610] sm:$0xff]  ;;  %v537_v11 = vld [vmem:[%s5573_s0 + $0x28] sm:$0xff] }
   0x4   :  { %1849 = vmatprep.subr.bf16.mxu1 %v869_v3  ;;  %v964_v12 = vpack.c.bf16 %v726_v10, %v724_v9  ;;  %v539_v13 = vld [vmem:[%s5573_s0 + $0x38] sm:$0xff]  ;;  %v729_v14 = vld [vmem:[%s5573_s0 + $0x628] sm:$0xff]  ;;  %v536_v18 = vld [vmem:[%s5573_s0 + $0x20] sm:$0xff] }
   0x5   :  { %v731_v15 = vld [vmem:[%s5573_s0 + $0x638] sm:$0xff]  ;;  %2368 = vmatprep.subr.bf16.mxu0 %v965_v7  ;;  %1850 = vmatpush1.bf16.msra.mxu1 %v868_v8  ;;  %v871_v16 = vpack.c.bf16 %v539_v13, %v537_v11  ;;  %v538_v19 = vld [vmem:[%s5573_s0 + $0x30] sm:$0xff]  ;;  %v728_v20 = vld [vmem:[%s5573_s0 + $0x620] sm:$0xff] }
   0x6   :  { %v967_v17 = vpack.c.bf16 %v731_v15, %v729_v14  ;;  %2369 = vmatpush1.bf16.msra.mxu0 %v964_v12  ;;  %v870_v21 = vpack.c.bf16 %v538_v19, %v536_v18  ;;  %v730_v22 = vld [vmem:[%s5573_s0 + $0x630] sm:$0xff]  ;;  %v541_v23 = vld [vmem:[%s5573_s0 + $0x48] sm:$0xff]  ;;  %v543_v24 = vld [vmem:[%s5573_s0 + $0x58] sm:$0xff] }
   0x7   :  { %1851 = vmatprep.subr.bf16.mxu1 %v871_v16  ;;  %v966_v25 = vpack.c.bf16 %v730_v22, %v728_v20  ;;  %v873_v26 = vpack.c.bf16 %v543_v24, %v541_v23  ;;  %v733_v27 = vld [vmem:[%s5573_s0 + $0x648] sm:$0xff]  ;;  %v735_v28 = vld [vmem:[%s5573_s0 + $0x658] sm:$0xff]  ;;  %v540_v29 = vld [vmem:[%s5573_s0 + $0x40] sm:$0xff] }
   0x8   :  { %2370 = vmatprep.subr.bf16.mxu0 %v967_v17  ;;  %v969_v30 = vpack.c.bf16 %v735_v28, %v733_v27  ;;  %v542_v31 = vld [vmem:[%s5573_s0 + $0x50] sm:$0xff]  ;;  %v732_v32 = vld [vmem:[%s5573_s0 + $0x640] sm:$0xff]  ;;  %v545_v35 = vld [vmem:[%s5573_s0 + $0x68] sm:$0xff] }
   0x9   :  { %v734_v33 = vld [vmem:[%s5573_s0 + $0x650] sm:$0xff]  ;;  %1852 = vmatpush1.bf16.msra.mxu1 %v870_v21  ;;  %v872_v34 = vpack.c.bf16 %v542_v31, %v540_v29  ;;  %v547_v36 = vld [vmem:[%s5573_s0 + $0x78] sm:$0xff]  ;;  %v737_v37 = vld [vmem:[%s5573_s0 + $0x668] sm:$0xff] }
   0xa   :  { %2371 = vmatpush1.bf16.msra.mxu0 %v966_v25  ;;  %1853 = vmatprep.subr.bf16.mxu1 %v873_v26  ;;  %v968_v38 = vpack.c.bf16 %v734_v33, %v732_v32  ;;  %v875_v39 = vpack.c.bf16 %v547_v36, %v545_v35  ;;  %v739_v40 = vld [vmem:[%s5573_s0 + $0x678] sm:$0xff]  ;;  %v544_v41 = vld [vmem:[%s5573_s0 + $0x60] sm:$0xff]  ;;  %v546_v42 = vld [vmem:[%s5573_s0 + $0x70] sm:$0xff] }
   0xb   :  { %2372 = vmatprep.subr.bf16.mxu0 %v969_v30  ;;  %v971_v43 = vpack.c.bf16 %v739_v40, %v737_v37  ;;  %v736_v44 = vld [vmem:[%s5573_s0 + $0x660] sm:$0xff]  ;;  %v738_v45 = vld [vmem:[%s5573_s0 + $0x670] sm:$0xff]  ;;  %v549_v46 = vld [vmem:[%s5573_s0 + $0x88] sm:$0xff]  ;;  %v874_v50 = vpack.c.bf16 %v546_v42, %v544_v41 }
   0xc   :  { %v551_v47 = vld [vmem:[%s5573_s0 + $0x98] sm:$0xff]  ;;  %v741_v48 = vld [vmem:[%s5573_s0 + $0x688] sm:$0xff]  ;;  %v970_v51 = vpack.c.bf16 %v738_v45, %v736_v44  ;;  %v548_v53 = vld [vmem:[%s5573_s0 + $0x80] sm:$0xff] }
   0xd   :  { %v743_v49 = vld [vmem:[%s5573_s0 + $0x698] sm:$0xff]  ;;  %1854 = vmatpush1.bf16.msra.mxu1 %v872_v34  ;;  %v877_v52 = vpack.c.bf16 %v551_v47, %v549_v46  ;;  %v550_v54 = vld [vmem:[%s5573_s0 + $0x90] sm:$0xff]  ;;  %v740_v55 = vld [vmem:[%s5573_s0 + $0x680] sm:$0xff]  ;;  %v187_v46 = vlaneseq }
   0xe   :  { %2373 = vmatpush1.bf16.msra.mxu0 %v968_v38  ;;  %1855 = vmatprep.subr.bf16.mxu1 %v875_v39  ;;  %v973_v56 = vpack.c.bf16 %v743_v49, %v741_v48  ;;  %v742_v57 = vld [vmem:[%s5573_s0 + $0x690] sm:$0xff]  ;;  %v553_v58 = vld [vmem:[%s5573_s0 + $0xa8] sm:$0xff]  ;;  %v555_v59 = vld [vmem:[%s5573_s0 + $0xb8] sm:$0xff]  ;;  %v876_v62 = vpack.c.bf16 %v550_v54, %v548_v53 }
   0xf   :  { %2374 = vmatprep.subr.bf16.mxu0 %v971_v43  ;;  %v745_v60 = vld [vmem:[%s5573_s0 + $0x6a8] sm:$0xff]  ;;  %v747_v61 = vld [vmem:[%s5573_s0 + $0x6b8] sm:$0xff]  ;;  %v972_v63 = vpack.c.bf16 %v742_v57, %v740_v55  ;;  %v879_v0 = vpack.c.bf16 %v555_v59, %v553_v58  ;;  %v552_v1 = vld [vmem:[%s5573_s0 + $0xa0] sm:$0xff]  ;;  %v3677_v59 = vshrl.u32 %v187_v46, 7 }
  0x10   :  { %v554_v2 = vld [vmem:[%s5573_s0 + $0xb0] sm:$0xff]  ;;  %v744_v3 = vld [vmem:[%s5573_s0 + $0x6a0] sm:$0xff]  ;;  %v975_v4 = vpack.c.bf16 %v747_v61, %v745_v60  ;;  %v557_v6 = vld [vmem:[%s5573_s0 + $0xc8] sm:$0xff] }
  0x11   :  { %1856 = vmatpush1.bf16.msra.mxu1 %v874_v50  ;;  %v746_v5 = vld [vmem:[%s5573_s0 + $0x6b0] sm:$0xff]  ;;  %v559_v7 = vld [vmem:[%s5573_s0 + $0xd8] sm:$0xff]  ;;  %v749_v8 = vld [vmem:[%s5573_s0 + $0x6c8] sm:$0xff]  ;;  %v878_v10 = vpack.c.bf16 %v554_v2, %v552_v1 }
  0x12   :  { %2375 = vmatpush1.bf16.msra.mxu0 %v970_v51  ;;  %1857 = vmatprep.subr.bf16.mxu1 %v877_v52  ;;  %v751_v9 = vld [vmem:[%s5573_s0 + $0x6d8] sm:$0xff]  ;;  %v974_v11 = vpack.c.bf16 %v746_v5, %v744_v3  ;;  %v881_v12 = vpack.c.bf16 %v559_v7, %v557_v6  ;;  %v556_v13 = vld [vmem:[%s5573_s0 + $0xc0] sm:$0xff]  ;;  %v558_v14 = vld [vmem:[%s5573_s0 + $0xd0] sm:$0xff] }
  0x13   :  { %2376 = vmatprep.subr.bf16.mxu0 %v973_v56  ;;  %v748_v15 = vld [vmem:[%s5573_s0 + $0x6c0] sm:$0xff]  ;;  %v977_v16 = vpack.c.bf16 %v751_v9, %v749_v8  ;;  %v750_v17 = vld [vmem:[%s5573_s0 + $0x6d0] sm:$0xff]  ;;  %v561_v18 = vld [vmem:[%s5573_s0 + $0xe8] sm:$0xff]  ;;  %v880_v22 = vpack.c.bf16 %v558_v14, %v556_v13  ;;  %v3704_v8 = vsub.s32 0, %v3677_v59  ;;  %v213_v13 = vsub.s32 6, %v3677_v59 }
  0x14   :  { %v563_v19 = vld [vmem:[%s5573_s0 + $0xf8] sm:$0xff]  ;;  %v753_v20 = vld [vmem:[%s5573_s0 + $0x6e8] sm:$0xff]  ;;  %v976_v23 = vpack.c.bf16 %v750_v17, %v748_v15  ;;  %v560_v25 = vld [vmem:[%s5573_s0 + $0xe0] sm:$0xff]  ;;  %v217_v14 = vsub.s32 7, %v3677_v59 }
  0x15   :  { %1858 = vmatpush1.bf16.msra.mxu1 %v876_v62  ;;  %v755_v21 = vld [vmem:[%s5573_s0 + $0x6f8] sm:$0xff]  ;;  %v883_v24 = vpack.c.bf16 %v563_v19, %v561_v18  ;;  %v562_v26 = vld [vmem:[%s5573_s0 + $0xf0] sm:$0xff]  ;;  %v752_v27 = vld [vmem:[%s5573_s0 + $0x6e0] sm:$0xff] }
  0x16   :  { %2377 = vmatpush1.bf16.msra.mxu0 %v972_v63  ;;  %1859 = vmatprep.subr.bf16.mxu1 %v879_v0  ;;  %v979_v28 = vpack.c.bf16 %v755_v21, %v753_v20  ;;  %v754_v29 = vld [vmem:[%s5573_s0 + $0x6f0] sm:$0xff]  ;;  %v565_v30 = vld [vmem:[%s5573_s0 + $0x108] sm:$0xff]  ;;  %v567_v31 = vld [vmem:[%s5573_s0 + $0x118] sm:$0xff]  ;;  %v882_v34 = vpack.c.bf16 %v562_v26, %v560_v25 }
  0x17   :  { %2378 = vmatprep.subr.bf16.mxu0 %v975_v4  ;;  %v757_v32 = vld [vmem:[%s5573_s0 + $0x708] sm:$0xff]  ;;  %v759_v33 = vld [vmem:[%s5573_s0 + $0x718] sm:$0xff]  ;;  %v978_v35 = vpack.c.bf16 %v754_v29, %v752_v27  ;;  %v885_v36 = vpack.c.bf16 %v567_v31, %v565_v30  ;;  %v564_v37 = vld [vmem:[%s5573_s0 + $0x100] sm:$0xff] }
  0x18   :  { %v566_v38 = vld [vmem:[%s5573_s0 + $0x110] sm:$0xff]  ;;  %v756_v39 = vld [vmem:[%s5573_s0 + $0x700] sm:$0xff]  ;;  %v981_v40 = vpack.c.bf16 %v759_v33, %v757_v32  ;;  %v569_v42 = vld [vmem:[%s5573_s0 + $0x128] sm:$0xff] }
  0x19   :  { %1860 = vmatpush1.bf16.msra.mxu1 %v878_v10  ;;  %v758_v41 = vld [vmem:[%s5573_s0 + $0x710] sm:$0xff]  ;;  %v571_v43 = vld [vmem:[%s5573_s0 + $0x138] sm:$0xff]  ;;  %v761_v44 = vld [vmem:[%s5573_s0 + $0x728] sm:$0xff]  ;;  %v884_v47 = vpack.c.bf16 %v566_v38, %v564_v37 }
  0x1a   :  { %2379 = vmatpush1.bf16.msra.mxu0 %v974_v11  ;;  %1861 = vmatprep.subr.bf16.mxu1 %v881_v12  ;;  %v763_v45 = vld [vmem:[%s5573_s0 + $0x738] sm:$0xff]  ;;  %v980_v48 = vpack.c.bf16 %v758_v41, %v756_v39  ;;  %v887_v49 = vpack.c.bf16 %v571_v43, %v569_v42  ;;  %v568_v50 = vld [vmem:[%s5573_s0 + $0x120] sm:$0xff]  ;;  %v570_v51 = vld [vmem:[%s5573_s0 + $0x130] sm:$0xff]  ;;  %v193_v12 = vsub.s32 1, %v3677_v59 }
  0x1b   :  { %2380 = vmatprep.subr.bf16.mxu0 %v977_v16  ;;  %v760_v52 = vld [vmem:[%s5573_s0 + $0x720] sm:$0xff]  ;;  %v983_v53 = vpack.c.bf16 %v763_v45, %v761_v44  ;;  %v762_v54 = vld [vmem:[%s5573_s0 + $0x730] sm:$0xff]  ;;  %v573_v55 = vld [vmem:[%s5573_s0 + $0x148] sm:$0xff]  ;;  %v886_v60 = vpack.c.bf16 %v570_v51, %v568_v50 }
  0x1c   :  { %v575_v56 = vld [vmem:[%s5573_s0 + $0x158] sm:$0xff]  ;;  %v765_v57 = vld [vmem:[%s5573_s0 + $0x748] sm:$0xff]  ;;  %v982_v61 = vpack.c.bf16 %v762_v54, %v760_v52  ;;  %v572_v63 = vld [vmem:[%s5573_s0 + $0x140] sm:$0xff] }
  0x1d   :  { %1862 = vmatpush1.bf16.msra.mxu1 %v880_v22  ;;  %v767_v58 = vld [vmem:[%s5573_s0 + $0x758] sm:$0xff]  ;;  %v889_v62 = vpack.c.bf16 %v575_v56, %v573_v55  ;;  %v574_v0 = vld [vmem:[%s5573_s0 + $0x150] sm:$0xff]  ;;  %v764_v1 = vld [vmem:[%s5573_s0 + $0x740] sm:$0xff] }
  0x1e   :  { %2381 = vmatpush1.bf16.msra.mxu0 %v976_v23  ;;  %1863 = vmatprep.subr.bf16.mxu1 %v883_v24  ;;  %v985_v2 = vpack.c.bf16 %v767_v58, %v765_v57  ;;  %v766_v3 = vld [vmem:[%s5573_s0 + $0x750] sm:$0xff]  ;;  %v577_v4 = vld [vmem:[%s5573_s0 + $0x168] sm:$0xff]  ;;  %v579_v5 = vld [vmem:[%s5573_s0 + $0x178] sm:$0xff]  ;;  %v888_v9 = vpack.c.bf16 %v574_v0, %v572_v63 }
  0x1f   :  { %2382 = vmatprep.subr.bf16.mxu0 %v979_v28  ;;  %v769_v6 = vld [vmem:[%s5573_s0 + $0x768] sm:$0xff]  ;;  %v771_v7 = vld [vmem:[%s5573_s0 + $0x778] sm:$0xff]  ;;  %v576_v10 = vld [vmem:[%s5573_s0 + $0x160] sm:$0xff]  ;;  %v984_v15 = vpack.c.bf16 %v766_v3, %v764_v1  ;;  %v891_v16 = vpack.c.bf16 %v579_v5, %v577_v4 }
  0x20   :  { %v578_v11 = vld [vmem:[%s5573_s0 + $0x170] sm:$0xff]  ;;  %v768_v17 = vld [vmem:[%s5573_s0 + $0x760] sm:$0xff]  ;;  %v581_v19 = vld [vmem:[%s5573_s0 + $0x188] sm:$0xff]  ;;  %v987_v20 = vpack.c.bf16 %v771_v7, %v769_v6 }
  0x21   :  { %1864 = vmatpush1.bf16.msra.mxu1 %v882_v34  ;;  %v770_v18 = vld [vmem:[%s5573_s0 + $0x770] sm:$0xff]  ;;  %v583_v21 = vld [vmem:[%s5573_s0 + $0x198] sm:$0xff]  ;;  %v773_v22 = vld [vmem:[%s5573_s0 + $0x788] sm:$0xff]  ;;  %v890_v24 = vpack.c.bf16 %v578_v11, %v576_v10 }
  0x22   :  { %2383 = vmatpush1.bf16.msra.mxu0 %v978_v35  ;;  %1865 = vmatprep.subr.bf16.mxu1 %v885_v36  ;;  %v775_v23 = vld [vmem:[%s5573_s0 + $0x798] sm:$0xff]  ;;  %v183_v25 = vld [vmem:[%s5574_s1] sm:$0xff]  ;;  %v582_v27 = vld [vmem:[%s5573_s0 + $0x190] sm:$0xff]  ;;  %v986_v32 = vpack.c.bf16 %v770_v18, %v768_v17  ;;  %v893_v33 = vpack.c.bf16 %v583_v21, %v581_v19 }
  0x23   :  { %2384 = vmatprep.subr.bf16.mxu0 %v981_v40  ;;  %v580_v26 = vld [vmem:[%s5573_s0 + $0x180] sm:$0xff]  ;;  %v190_v28 = vrot.slane %v183_v25, %v3704_v8  ;;  %v194_v29 = vrot.slane %v183_v25, %v193_v12  ;;  %v214_v30 = vrot.slane %v183_v25, %v213_v13  ;;  %v218_v31 = vrot.slane %v183_v25, %v217_v14  ;;  %v774_v36 = vld [vmem:[%s5573_s0 + $0x790] sm:$0xff]  ;;  %v585_v37 = vld [vmem:[%s5573_s0 + $0x1a8] sm:$0xff] }
  0x24   :  { %v989_v34 = vpack.c.bf16 %v775_v23, %v773_v22  ;;  %v772_v35 = vld [vmem:[%s5573_s0 + $0x780] sm:$0xff]  ;;  %v587_v38 = vld [vmem:[%s5573_s0 + $0x1b8] sm:$0xff]  ;;  %v777_v39 = vld [vmem:[%s5573_s0 + $0x7a8] sm:$0xff]  ;;  %v892_v45 = vpack.c.bf16 %v582_v27, %v580_v26 }
  0x25   :  { %1866 = vmatpush1.bf16.msra.mxu1 %v884_v47  ;;  %v779_v40 = vld [vmem:[%s5573_s0 + $0x7b8] sm:$0xff]  ;;  %v242_v41 = vpack.c.bf16 %v190_v28, %v190_v28  ;;  %v243_v42 = vpack.c.bf16 %v194_v29, %v194_v29  ;;  %v248_v43 = vpack.c.bf16 %v214_v30, %v214_v30  ;;  %v249_v44 = vpack.c.bf16 %v218_v31, %v218_v31  ;;  %v584_v46 = vld [vmem:[%s5573_s0 + $0x1a0] sm:$0xff]  ;;  %v586_v47 = vld [vmem:[%s5573_s0 + $0x1b0] sm:$0xff] }
  0x26   :  { %2385 = vmatpush1.bf16.msra.mxu0 %v980_v48  ;;  %1867 = vmatprep.subr.bf16.mxu1 %v887_v49  ;;  %v776_v48 = vld [vmem:[%s5573_s0 + $0x7a0] sm:$0xff]  ;;  %v895_v54 = vpack.c.bf16 %v587_v38, %v585_v37  ;;  %v991_v55 = vpack.c.bf16 %v779_v40, %v777_v39  ;;  %v778_v56 = vld [vmem:[%s5573_s0 + $0x7b0] sm:$0xff]  ;;  %v589_v57 = vld [vmem:[%s5573_s0 + $0x1c8] sm:$0xff]  ;;  %v894_v6 = vpack.c.bf16 %v586_v47, %v584_v46 }
  0x27   :  { %2386 = vmatprep.subr.bf16.mxu0 %v983_v53  ;;  %v254_v49 = vpack.i.b16 %v242_v41, %v242_v41  ;;  %v261_v50 = vpack.i.b16 %v243_v42, %v243_v42  ;;  %v296_v51 = vpack.i.b16 %v248_v43, %v248_v43  ;;  %v303_v52 = vpack.i.b16 %v249_v44, %v249_v44  ;;  %v591_v58 = vld [vmem:[%s5573_s0 + $0x1d8] sm:$0xff]  ;;  %v21_v3 = vld [vmem:[%s5575_s2 + $0x2c] sm:$0xff]  ;;  %v24_v5 = vld [vmem:[%s5575_s2 + $0x44] sm:$0xff] }
  0x28   :  { %v988_v53 = vpack.c.bf16 %v774_v36, %v772_v35  ;;  %v18_v4 = vld [vmem:[%s5575_s2 + $0x18] sm:$0xff]  ;;  %v990_v10 = vpack.c.bf16 %v778_v56, %v776_v48  ;;  %v897_v11 = vpack.c.bf16 %v591_v58, %v589_v57  ;;  %v588_v14 = vld [vmem:[%s5573_s0 + $0x1c0] sm:$0xff]  ;;  %v782_v17 = vld [vmem:[%s5573_s0 + $0x7d0] sm:$0xff] }
  0x29   :  { %1868 = vmatpush1.bf16.msra.mxu1 %v886_v60  ;;  %v781_v60 = vld [vmem:[%s5573_s0 + $0x7c8] sm:$0xff]  ;;  %v259_v63 = vrot.slane %v254_v49, %v3704_v8  ;;  %v266_v0 = vrot.slane %v261_v50, %v3704_v8  ;;  %v301_v1 = vrot.slane %v296_v51, %v3704_v8  ;;  %v595_v19 = vld [vmem:[%s5573_s0 + $0x1f8] sm:$0xff]  ;;  %v592_v27 = vld [vmem:[%s5573_s0 + $0x1e0] sm:$0xff] }
  0x2a   :  { %2387 = vmatpush1.bf16.msra.mxu0 %v982_v61  ;;  %1869 = vmatprep.subr.bf16.mxu1 %v889_v62  ;;  %v783_v61 = vld [vmem:[%s5573_s0 + $0x7d8] sm:$0xff]  ;;  %v15_v62 = vld [vmem:[%s5575_s2] sm:$0xff]  ;;  %v593_v18 = vld [vmem:[%s5573_s0 + $0x1e8] sm:$0xff] }
  0x2b   :  { %2388 = vmatprep.subr.bf16.mxu0 %v985_v2  ;;  %v308_v2 = vrot.slane %v303_v52, %v3704_v8  ;;  %v3803_v7 = vcombine.low %v259_v63, %v266_v0  ;;  %v993_v13 = vpack.c.bf16 %v783_v61, %v781_v60  ;;  %v787_v25 = vld [vmem:[%s5573_s0 + $0x7f8] sm:$0xff]  ;;  %v594_v28 = vld [vmem:[%s5573_s0 + $0x1f0] sm:$0xff]  ;;  %v784_v29 = vld [vmem:[%s5573_s0 + $0x7e0] sm:$0xff] }
  0x2c   :  { %v597_v35 = vld [vmem:[%s5573_s0 + $0x208] sm:$0xff]  ;;  %v599_v36 = vld [vmem:[%s5573_s0 + $0x218] sm:$0xff]  ;;  %v30_v42 = vld [vmem:[%s5575_s2 + $0x70] sm:$0xff]  ;;  %v898_v44 = vpack.c.bf16 %v594_v28, %v592_v27 }
  0x2d   :  { %1870 = vmatpush1.bf16.msra.mxu1 %v888_v9  ;;  %v3805_v9 = vcombine.low %v301_v1, %v308_v2  ;;  %v3829_v21 = vmul.bf16 %v3803_v7, %v21_v3  ;;  %v789_v38 = vld [vmem:[%s5573_s0 + $0x808] sm:$0xff]  ;;  %v27_v39 = vld [vmem:[%s5575_s2 + $0x58] sm:$0xff]  ;;  %v901_v46 = vpack.c.bf16 %v599_v36, %v597_v35  ;;  %v596_v47 = vld [vmem:[%s5573_s0 + $0x200] sm:$0xff] }
  0x2e   :  { %2389 = vmatpush1.bf16.msra.mxu0 %v984_v15  ;;  %1871 = vmatprep.subr.bf16.mxu1 %v891_v16  ;;  %v590_v15 = vld [vmem:[%s5573_s0 + $0x1d0] sm:$0xff]  ;;  %v780_v16 = vld [vmem:[%s5573_s0 + $0x7c0] sm:$0xff]  ;;  %v791_v41 = vld [vmem:[%s5573_s0 + $0x818] sm:$0xff]  ;;  %v3893_v50 = vmul.bf16 %v3803_v7, %v27_v39 }
  0x2f   :  { %2390 = vmatprep.subr.bf16.mxu0 %v987_v20  ;;  %v3826_v20 = vmul.bf16 %v3803_v7, %v15_v62  ;;  %v3832_v22 = vmul.bf16 %v3805_v9, %v18_v4  ;;  %v3835_v23 = vmul.bf16 %v3805_v9, %v24_v5  ;;  %v896_v26 = vpack.c.bf16 %v590_v15, %v588_v14  ;;  %v33_v40 = vld [vmem:[%s5575_s2 + $0x84] sm:$0xff]  ;;  %v36_v43 = vld [vmem:[%s5575_s2 + $0x9c] sm:$0xff]  ;;  %v598_v48 = vld [vmem:[%s5573_s0 + $0x210] sm:$0xff] }
  0x30   :  { %v788_v49 = vld [vmem:[%s5573_s0 + $0x800] sm:$0xff]  ;;  %v3896_v51 = vmul.bf16 %v3803_v7, %v33_v40  ;;  %v997_v52 = vpack.c.bf16 %v791_v41, %v789_v38  ;;  %v3908_v56 = vmul.bf16 %v3805_v9, %v30_v42  ;;  %v3911_v57 = vmul.bf16 %v3805_v9, %v36_v43  ;;  %v793_v60 = vld [vmem:[%s5573_s0 + $0x828] sm:$0xff]  ;;  %v795_v61 = vld [vmem:[%s5573_s0 + $0x838] sm:$0xff] }
  0x31   :  { %1872 = vmatpush1.bf16.msra.mxu1 %v890_v24  ;;  %v785_v24 = vld [vmem:[%s5573_s0 + $0x7e8] sm:$0xff]  ;;  %v2955_v30 = vcombine.high %v3826_v20, %v3829_v21  ;;  %v2961_v31 = vcombine.high %v3832_v22, %v3835_v23  ;;  %v2954_v58 = vcombine.low %v3826_v20, %v3829_v21  ;;  %v600_v62 = vld [vmem:[%s5573_s0 + $0x220] sm:$0xff]  ;;  %v2960_v63 = vcombine.low %v3832_v22, %v3835_v23  ;;  %v602_v1 = vld [vmem:[%s5573_s0 + $0x230] sm:$0xff] }
  0x32   :  { %2391 = vmatpush1.bf16.msra.mxu0 %v986_v32  ;;  %1873 = vmatprep.subr.bf16.mxu1 %v893_v33  ;;  %v992_v32 = vpack.c.bf16 %v782_v17, %v780_v16  ;;  %v899_v33 = vpack.c.bf16 %v595_v19, %v593_v18  ;;  %v995_v37 = vpack.c.bf16 %v787_v25, %v785_v24  ;;  %v792_v2 = vld [vmem:[%s5573_s0 + $0x820] sm:$0xff]  ;;  %v794_v3 = vld [vmem:[%s5573_s0 + $0x830] sm:$0xff]  ;;  %v607_v15 = vld [vmem:[%s5573_s0 + $0x258] sm:$0xff] }
  0x33   :  { %2392 = vmatprep.subr.bf16.mxu0 %v989_v34  ;;  %v786_v34 = vld [vmem:[%s5573_s0 + $0x7f0] sm:$0xff]  ;;  %1881 = vmatprep.mubr.bf16.mxu1 %v2955_v30  ;;  %v900_v0 = vpack.c.bf16 %v598_v48, %v596_v47  ;;  %v2966_v5 = vcombine.high %v3893_v50, %v3896_v51  ;;  %v2972_v14 = vcombine.high %v3908_v56, %v3911_v57  ;;  %v42_v16 = vld [vmem:[%s5575_s2 + $0xc8] sm:$0xff]  ;;  %v799_v21 = vld [vmem:[%s5573_s0 + $0x858] sm:$0xff] }
  0x34   :  { %2400 = vmatprep.mubr.bf16.mxu0 %v2961_v31  ;;  %v48_v17 = vld [vmem:[%s5575_s2 + $0xf4] sm:$0xff]  ;;  %v999_v18 = vpack.c.bf16 %v795_v61, %v793_v60  ;;  %v902_v19 = vpack.c.bf16 %v602_v1, %v600_v62  ;;  %v797_v20 = vld [vmem:[%s5573_s0 + $0x848] sm:$0xff]  ;;  %v998_v22 = vpack.c.bf16 %v794_v3, %v792_v2  ;;  %v796_v31 = vld [vmem:[%s5573_s0 + $0x840] sm:$0xff]  ;;  %v2971_v36 = vcombine.low %v3908_v56, %v3911_v57 }
  0x35   :  { %1874 = vmatpush1.bf16.msra.mxu1 %v892_v45  ;;  %v994_v45 = vpack.c.bf16 %v786_v34, %v784_v29  ;;  %v3973_v27 = vmul.bf16 %v3805_v9, %v48_v17  ;;  %v1001_v28 = vpack.c.bf16 %v799_v21, %v797_v20  ;;  %v604_v29 = vld [vmem:[%s5573_s0 + $0x240] sm:$0xff]  ;;  %v606_v30 = vld [vmem:[%s5573_s0 + $0x250] sm:$0xff]  ;;  %v609_v34 = vld [vmem:[%s5573_s0 + $0x268] sm:$0xff] }
  0x36   :  { %2393 = vmatpush1.bf16.msra.mxu0 %v988_v53  ;;  %1875 = vmatprep.subr.bf16.mxu1 %v895_v54  ;;  %v790_v53 = vld [vmem:[%s5573_s0 + $0x810] sm:$0xff]  ;;  %v601_v54 = vld [vmem:[%s5573_s0 + $0x228] sm:$0xff]  ;;  %v611_v35 = vld [vmem:[%s5573_s0 + $0x278] sm:$0xff]  ;;  %v904_v41 = vpack.c.bf16 %v606_v30, %v604_v29 }
  0x37   :  { %2394 = vmatprep.subr.bf16.mxu0 %v991_v55  ;;  %v603_v55 = vld [vmem:[%s5573_s0 + $0x238] sm:$0xff]  ;;  %v996_v4 = vpack.c.bf16 %v790_v53, %v788_v49  ;;  %v801_v38 = vld [vmem:[%s5573_s0 + $0x868] sm:$0xff]  ;;  %v608_v40 = vld [vmem:[%s5573_s0 + $0x260] sm:$0xff]  ;;  %v907_v47 = vpack.c.bf16 %v611_v35, %v609_v34 }
  0x38   :  { %v803_v39 = vld [vmem:[%s5573_s0 + $0x878] sm:$0xff]  ;;  %v610_v43 = vld [vmem:[%s5573_s0 + $0x270] sm:$0xff]  ;;  %v800_v48 = vld [vmem:[%s5573_s0 + $0x860] sm:$0xff] }
  0x39   :  { %1876 = vmatpush1.bf16.msra.mxu1 %v894_v6  ;;  %v605_v6 = vld [vmem:[%s5573_s0 + $0x248] sm:$0xff]  ;;  %v54_v49 = vld [vmem:[%s5575_s2 + $0x120] sm:$0xff]  ;;  %v906_v60 = vpack.c.bf16 %v610_v43, %v608_v40  ;;  %v614_v2 = vld [vmem:[%s5573_s0 + $0x290] sm:$0xff] }
  0x3a   :  { %2395 = vmatpush1.bf16.msra.mxu0 %v990_v10  ;;  %1877 = vmatprep.subr.bf16.mxu1 %v897_v11  ;;  %v39_v10 = vld [vmem:[%s5575_s2 + $0xb0] sm:$0xff]  ;;  %v45_v11 = vld [vmem:[%s5575_s2 + $0xdc] sm:$0xff]  ;;  %v905_v25 = vpack.c.bf16 %v607_v15, %v605_v6  ;;  %v613_v53 = vld [vmem:[%s5573_s0 + $0x288] sm:$0xff]  ;;  %v4050_v61 = vmul.bf16 %v3805_v9, %v54_v49 }
  0x3b   :  { %2396 = vmatprep.subr.bf16.mxu0 %v993_v13  ;;  %v903_v13 = vpack.c.bf16 %v603_v55, %v601_v54  ;;  %v3964_v23 = vmul.bf16 %v3803_v7, %v39_v10  ;;  %v3967_v24 = vmul.bf16 %v3803_v7, %v45_v11  ;;  %v615_v54 = vld [vmem:[%s5573_s0 + $0x298] sm:$0xff]  ;;  %v805_v57 = vld [vmem:[%s5573_s0 + $0x888] sm:$0xff]  ;;  %v612_v1 = vld [vmem:[%s5573_s0 + $0x280] sm:$0xff] }
  0x3c   :  { %v804_v3 = vld [vmem:[%s5573_s0 + $0x880] sm:$0xff]  ;;  %v806_v6 = vld [vmem:[%s5573_s0 + $0x890] sm:$0xff]  ;;  %v617_v10 = vld [vmem:[%s5573_s0 + $0x2a8] sm:$0xff] }
  0x3d   :  { %1878 = vmatpush1.bf16.msra.mxu1 %v896_v26  ;;  %v3970_v26 = vmul.bf16 %v3805_v9, %v42_v16  ;;  %v619_v11 = vld [vmem:[%s5573_s0 + $0x2b8] sm:$0xff]  ;;  %v63_v15 = vld [vmem:[%s5575_s2 + $0x160] sm:$0xff]  ;;  %v809_v16 = vld [vmem:[%s5573_s0 + $0x8a8] sm:$0xff] }
  0x3e   :  { %2397 = vmatpush1.bf16.msra.mxu0 %v992_v32  ;;  %1879 = vmatprep.subr.bf16.mxu1 %v899_v33  ;;  %v2965_v32 = vcombine.low %v3893_v50, %v3896_v51  ;;  %v798_v33 = vld [vmem:[%s5573_s0 + $0x850] sm:$0xff]  ;;  %v1003_v51 = vpack.c.bf16 %v803_v39, %v801_v38  ;;  %v811_v17 = vld [vmem:[%s5573_s0 + $0x8b8] sm:$0xff]  ;;  %v621_v30 = vld [vmem:[%s5573_s0 + $0x2c8] sm:$0xff] }
  0x3f   :  { %2398 = vmatprep.subr.bf16.mxu0 %v995_v37  ;;  %v2977_v37 = vcombine.high %v3964_v23, %v3967_v24  ;;  %v2983_v42 = vcombine.high %v3970_v26, %v3973_v27  ;;  %v60_v50 = vld [vmem:[%s5575_s2 + $0x14c] sm:$0xff]  ;;  %v66_v21 = vld [vmem:[%s5575_s2 + $0x178] sm:$0xff]  ;;  %v812_v43 = vld [vmem:[%s5573_s0 + $0x8c0] sm:$0xff] }
  0x40   :  { %v4053_v62 = vmul.bf16 %v3805_v9, %v60_v50  ;;  %v69_v20 = vld [vmem:[%s5575_s2 + $0x18c] sm:$0xff]  ;;  %v815_v35 = vld [vmem:[%s5573_s0 + $0x8d8] sm:$0xff] }
  0x41   :  { %1880 = vmatpush1.bf16.msra.mxu1 %v898_v44  ;;  %v51_v44 = vld [vmem:[%s5575_s2 + $0x108] sm:$0xff]  ;;  %v810_v29 = vld [vmem:[%s5573_s0 + $0x8b0] sm:$0xff] }
  0x42   :  { %2399 = vmatpush1.bf16.msra.mxu0 %v994_v45  ;;  %2022 = vmatprep.subr.bf16.mxu1 %v901_v46  ;;  %v57_v45 = vld [vmem:[%s5575_s2 + $0x134] sm:$0xff]  ;;  %v1000_v46 = vpack.c.bf16 %v798_v33, %v796_v31  ;;  %v4038_v55 = vmul.bf16 %v3803_v7, %v51_v44  ;;  %v4121_v33 = vmul.bf16 %v3803_v7, %v69_v20  ;;  %v813_v34 = vld [vmem:[%s5573_s0 + $0x8c8] sm:$0xff]  ;;  %v820_v20 = vld [vmem:[%s5573_s0 + $0x900] sm:$0xff] }
  0x43   :  { %2541 = vmatprep.subr.bf16.mxu0 %v997_v52  ;;  %v802_v52 = vld [vmem:[%s5573_s0 + $0x870] sm:$0xff]  ;;  %v4041_v56 = vmul.bf16 %v3803_v7, %v57_v45  ;;  %v623_v31 = vld [vmem:[%s5573_s0 + $0x2d8] sm:$0xff]  ;;  %v1009_v45 = vpack.c.bf16 %v815_v35, %v813_v34  ;;  %v2993_v49 = vcombine.low %v4050_v61, %v4053_v62 }
  0x44   :  { %1882 = vmatmul.mubr.bf16.vlgmr.msra.gmra.mrb[0].mxu1 %v2954_v58  ;;  %v807_v58 = vld [vmem:[%s5573_s0 + $0x898] sm:$0xff]  ;;  %v913_v40 = vpack.c.bf16 %v623_v31, %v621_v30 }
  0x45   :  { %2401 = vmatmul.mubr.bf16.vlgmr.msra.gmra.mrb[0].mxu0 %v2960_v63  ;;  %2023 = vmatpush1.bf16.msra.mxu1 %v900_v0  ;;  %v1002_v63 = vpack.c.bf16 %v802_v52, %v800_v48  ;;  %v909_v0 = vpack.c.bf16 %v615_v54, %v613_v53  ;;  %v2987_v44 = vcombine.low %v4038_v55, %v4041_v56  ;;  %v627_v48 = vld [vmem:[%s5573_s0 + $0x2f8] sm:$0xff]  ;;  %v817_v52 = vld [vmem:[%s5573_s0 + $0x8e8] sm:$0xff] }
  0x46   :  { %2542 = vmatpush1.bf16.msra.mxu0 %v996_v4  ;;  %1891 = vmatprep.mubr.bf16.mxu1 %v2966_v5  ;;  %v2976_v4 = vcombine.low %v3964_v23, %v3967_v24  ;;  %v1005_v5 = vpack.c.bf16 %v807_v58, %v805_v57  ;;  %v1004_v23 = vpack.c.bf16 %v806_v6, %v804_v3  ;;  %v819_v53 = vld [vmem:[%s5573_s0 + $0x8f8] sm:$0xff]  ;;  %v629_v3 = vld [vmem:[%s5573_s0 + $0x308] sm:$0xff] }
  0x47   :  { %2024 = vmatprep.subr.bf16.mxu1 %v903_v13  ;;  %2410 = vmatprep.mubr.bf16.mxu0 %v2972_v14  ;;  %v2982_v13 = vcombine.low %v3970_v26, %v3973_v27  ;;  %v2988_v14 = vcombine.high %v4038_v55, %v4041_v56  ;;  %v911_v24 = vpack.c.bf16 %v619_v11, %v617_v10  ;;  %v618_v26 = vld [vmem:[%s5573_s0 + $0x2b0] sm:$0xff]  ;;  %v808_v27 = vld [vmem:[%s5573_s0 + $0x8a0] sm:$0xff]  ;;  %v821_v10 = vld [vmem:[%s5573_s0 + $0x908] sm:$0xff] }
  0x48   :  { %2543 = vmatprep.subr.bf16.mxu0 %v999_v18  ;;  %v2994_v18 = vcombine.high %v4050_v61, %v4053_v62  ;;  %v1006_v39 = vpack.c.bf16 %v810_v29, %v808_v27  ;;  %v81_v55 = vld [vmem:[%s5575_s2 + $0x1e4] sm:$0xff]  ;;  %v78_v56 = vld [vmem:[%s5575_s2 + $0x1d0] sm:$0xff]  ;;  %v84_v57 = vld [vmem:[%s5575_s2 + $0x1fc] sm:$0xff] }
  0x49   :  { %2025 = vmatpush1.bf16.msra.mxu1 %v902_v19  ;;  %v908_v19 = vpack.c.bf16 %v614_v2, %v612_v1  ;;  %v624_v62 = vld [vmem:[%s5573_s0 + $0x2e0] sm:$0xff]  ;;  %v1011_v1 = vpack.c.bf16 %v819_v53, %v817_v52  ;;  %v818_v2 = vld [vmem:[%s5573_s0 + $0x8f0] sm:$0xff]  ;;  %v4201_v6 = vmul.bf16 %v3803_v7, %v81_v55  ;;  %v823_v11 = vld [vmem:[%s5573_s0 + $0x918] sm:$0xff] }
  0x4a   :  { %2544 = vmatpush1.bf16.msra.mxu0 %v998_v22  ;;  %2026 = vmatprep.subr.bf16.mxu1 %v905_v25  ;;  %v72_v22 = vld [vmem:[%s5575_s2 + $0x1a4] sm:$0xff]  ;;  %v827_v30 = vld [vmem:[%s5573_s0 + $0x938] sm:$0xff]  ;;  %v638_v53 = vld [vmem:[%s5573_s0 + $0x350] sm:$0xff] }
  0x4b   :  { %2545 = vmatprep.subr.bf16.mxu0 %v1001_v28  ;;  %v616_v25 = vld [vmem:[%s5573_s0 + $0x2a0] sm:$0xff]  ;;  %v1007_v28 = vpack.c.bf16 %v811_v17, %v809_v16  ;;  %v825_v29 = vld [vmem:[%s5573_s0 + $0x928] sm:$0xff]  ;;  %v96_v34 = vld [vmem:[%s5575_s2 + $0x254] sm:$0xff] }
  0x4c   :  { %1892 = vmatmul.mubr.bf16.gmra.mrb[4].mxu1 %v2965_v32  ;;  %v4118_v32 = vmul.bf16 %v3803_v7, %v63_v15  ;;  %v910_v38 = vpack.c.bf16 %v618_v26, %v616_v25  ;;  %v635_v25 = vld [vmem:[%s5573_s0 + $0x338] sm:$0xff]  ;;  %v636_v52 = vld [vmem:[%s5573_s0 + $0x340] sm:$0xff] }
  0x4d   :  { %2411 = vmatmul.mubr.bf16.gmra.mrb[4].mxu0 %v2971_v36  ;;  %1901 = vmatprep.mubr.bf16.mxu1 %v2977_v37  ;;  %v4130_v36 = vmul.bf16 %v3805_v9, %v66_v21  ;;  %v4133_v37 = vmul.bf16 %v3805_v9, %v72_v22  ;;  %v1013_v22 = vpack.c.bf16 %v823_v11, %v821_v10  ;;  %v108_v11 = vld [vmem:[%s5575_s2 + $0x2ac] sm:$0xff] }
  0x4e   :  { %2027 = vmatpush1.bf16.msra.mxu1 %v904_v41  ;;  %2420 = vmatprep.mubr.bf16.mxu0 %v2983_v42  ;;  %v620_v41 = vld [vmem:[%s5573_s0 + $0x2c0] sm:$0xff]  ;;  %v622_v42 = vld [vmem:[%s5573_s0 + $0x2d0] sm:$0xff]  ;;  %v2999_v50 = vcombine.high %v4118_v32, %v4121_v33  ;;  %v2998_v21 = vcombine.low %v4118_v32, %v4121_v33  ;;  %v90_v33 = vld [vmem:[%s5575_s2 + $0x228] sm:$0xff] }
  0x4f   :  { %2546 = vmatpush1.bf16.msra.mxu0 %v1000_v46  ;;  %2028 = vmatprep.subr.bf16.mxu1 %v907_v47  ;;  %v814_v46 = vld [vmem:[%s5573_s0 + $0x8d0] sm:$0xff]  ;;  %v625_v47 = vld [vmem:[%s5573_s0 + $0x2e8] sm:$0xff]  ;;  %v3005_v54 = vcombine.high %v4130_v36, %v4133_v37  ;;  %v912_v58 = vpack.c.bf16 %v622_v42, %v620_v41  ;;  %v3004_v26 = vcombine.low %v4130_v36, %v4133_v37  ;;  %v93_v32 = vld [vmem:[%s5575_s2 + $0x23c] sm:$0xff] }
  0x50   :  { %2547 = vmatprep.subr.bf16.mxu0 %v1003_v51  ;;  %v75_v51 = vld [vmem:[%s5575_s2 + $0x1b8] sm:$0xff]  ;;  %v915_v61 = vpack.c.bf16 %v627_v48, %v625_v47  ;;  %v1015_v41 = vpack.c.bf16 %v827_v30, %v825_v29  ;;  %v826_v42 = vld [vmem:[%s5573_s0 + $0x930] sm:$0xff]  ;;  %v829_v47 = vld [vmem:[%s5573_s0 + $0x948] sm:$0xff] }
  0x51   :  { %v831_v48 = vld [vmem:[%s5573_s0 + $0x958] sm:$0xff]  ;;  %v837_v29 = vld [vmem:[%s5573_s0 + $0x988] sm:$0xff] }
  0x52   :  { %2029 = vmatpush1.bf16.msra.mxu1 %v906_v60  ;;  %v1008_v60 = vpack.c.bf16 %v814_v46, %v812_v43  ;;  %v637_v43 = vld [vmem:[%s5573_s0 + $0x348] sm:$0xff]  ;;  %v4281_v46 = vmul.bf16 %v3803_v7, %v93_v32  ;;  %v839_v30 = vld [vmem:[%s5573_s0 + $0x998] sm:$0xff] }
  0x53   :  { %2548 = vmatpush1.bf16.msra.mxu0 %v1002_v63  ;;  %2030 = vmatprep.subr.bf16.mxu1 %v909_v0  ;;  %v626_v63 = vld [vmem:[%s5573_s0 + $0x2f0] sm:$0xff]  ;;  %v816_v0 = vld [vmem:[%s5573_s0 + $0x8e0] sm:$0xff] }
  0x54   :  { %1902 = vmatmul.mubr.bf16.gmra.mrb[8].mxu1 %v2976_v4  ;;  %2549 = vmatprep.subr.bf16.mxu0 %v1005_v5  ;;  %v631_v4 = vld [vmem:[%s5573_s0 + $0x318] sm:$0xff]  ;;  %v4198_v5 = vmul.bf16 %v3803_v7, %v75_v51  ;;  %v914_v15 = vpack.c.bf16 %v626_v63, %v624_v62  ;;  %v1010_v16 = vpack.c.bf16 %v818_v2, %v816_v0  ;;  %v99_v62 = vld [vmem:[%s5575_s2 + $0x268] sm:$0xff] }
  0x55   :  { %2421 = vmatmul.mubr.bf16.gmra.mrb[8].mxu0 %v2982_v13  ;;  %1911 = vmatprep.mubr.bf16.mxu1 %v2988_v14  ;;  %v4210_v13 = vmul.bf16 %v3805_v9, %v78_v56  ;;  %v4213_v14 = vmul.bf16 %v3805_v9, %v84_v57  ;;  %v917_v17 = vpack.c.bf16 %v631_v4, %v629_v3  ;;  %v830_v57 = vld [vmem:[%s5573_s0 + $0x950] sm:$0xff]  ;;  %v102_v3 = vld [vmem:[%s5575_s2 + $0x280] sm:$0xff]  ;;  %v833_v4 = vld [vmem:[%s5573_s0 + $0x968] sm:$0xff] }
  0x56   :  { %2430 = vmatprep.mubr.bf16.mxu0 %v2994_v18  ;;  %2031 = vmatpush1.bf16.msra.mxu1 %v908_v19  ;;  %v628_v18 = vld [vmem:[%s5573_s0 + $0x300] sm:$0xff]  ;;  %v630_v19 = vld [vmem:[%s5573_s0 + $0x310] sm:$0xff]  ;;  %v3010_v27 = vcombine.high %v4198_v5, %v4201_v6  ;;  %v1017_v0 = vpack.c.bf16 %v831_v48, %v829_v47  ;;  %v649_v47 = vld [vmem:[%s5573_s0 + $0x3a8] sm:$0xff] }
  0x57   :  { %2550 = vmatpush1.bf16.msra.mxu0 %v1004_v23  ;;  %2032 = vmatprep.subr.bf16.mxu1 %v911_v24  ;;  %v822_v23 = vld [vmem:[%s5573_s0 + $0x910] sm:$0xff]  ;;  %v633_v24 = vld [vmem:[%s5573_s0 + $0x328] sm:$0xff]  ;;  %v3016_v31 = vcombine.high %v4210_v13, %v4213_v14  ;;  %v916_v35 = vpack.c.bf16 %v630_v19, %v628_v18  ;;  %v832_v19 = vld [vmem:[%s5573_s0 + $0x960] sm:$0xff] }
  0x58   :  { %2551 = vmatprep.subr.bf16.mxu0 %v1007_v28  ;;  %v87_v28 = vld [vmem:[%s5575_s2 + $0x210] sm:$0xff]  ;;  %v1012_v36 = vpack.c.bf16 %v822_v23, %v820_v20  ;;  %v919_v37 = vpack.c.bf16 %v635_v25, %v633_v24  ;;  %v4363_v24 = vmul.bf16 %v3803_v7, %v99_v62  ;;  %v651_v48 = vld [vmem:[%s5573_s0 + $0x3b8] sm:$0xff]  ;;  %v648_v62 = vld [vmem:[%s5573_s0 + $0x3a0] sm:$0xff] }
  0x59   :  { %v105_v63 = vld [vmem:[%s5575_s2 + $0x294] sm:$0xff] }
  0x5a   :  { %2033 = vmatpush1.bf16.msra.mxu1 %v910_v38  ;;  %v632_v38 = vld [vmem:[%s5573_s0 + $0x320] sm:$0xff]  ;;  %v642_v18 = vld [vmem:[%s5573_s0 + $0x370] sm:$0xff]  ;;  %v4366_v25 = vmul.bf16 %v3803_v7, %v105_v63 }
  0x5b   :  { %2552 = vmatpush1.bf16.msra.mxu0 %v1006_v39  ;;  %2034 = vmatprep.subr.bf16.mxu1 %v913_v40  ;;  %v634_v39 = vld [vmem:[%s5573_s0 + $0x330] sm:$0xff]  ;;  %v824_v40 = vld [vmem:[%s5573_s0 + $0x920] sm:$0xff] }
  0x5c   :  { %1912 = vmatmul.mubr.bf16.gmra.mrb[12].mxu1 %v2987_v44  ;;  %2553 = vmatprep.subr.bf16.mxu0 %v1009_v45  ;;  %v639_v44 = vld [vmem:[%s5573_s0 + $0x358] sm:$0xff]  ;;  %v4278_v45 = vmul.bf16 %v3803_v7, %v87_v28  ;;  %v918_v51 = vpack.c.bf16 %v634_v39, %v632_v38  ;;  %v1014_v55 = vpack.c.bf16 %v826_v42, %v824_v40  ;;  %v834_v20 = vld [vmem:[%s5573_s0 + $0x970] sm:$0xff]  ;;  %v836_v39 = vld [vmem:[%s5573_s0 + $0x980] sm:$0xff] }
  0x5d   :  { %2431 = vmatmul.mubr.bf16.gmra.mrb[12].mxu0 %v2993_v49  ;;  %1921 = vmatprep.mubr.bf16.mxu1 %v2999_v50  ;;  %v4290_v49 = vmul.bf16 %v3805_v9, %v90_v33  ;;  %v4293_v50 = vmul.bf16 %v3805_v9, %v96_v34  ;;  %v921_v56 = vpack.c.bf16 %v639_v44, %v637_v43  ;;  %v646_v38 = vld [vmem:[%s5573_s0 + $0x390] sm:$0xff] }
  0x5e   :  { %2440 = vmatprep.mubr.bf16.mxu0 %v3005_v54  ;;  %2035 = vmatpush1.bf16.msra.mxu1 %v912_v58  ;;  %v828_v54 = vld [vmem:[%s5573_s0 + $0x940] sm:$0xff]  ;;  %v641_v58 = vld [vmem:[%s5573_s0 + $0x368] sm:$0xff]  ;;  %v3021_v2 = vcombine.high %v4278_v45, %v4281_v46  ;;  %v4375_v28 = vmul.bf16 %v3805_v9, %v102_v3  ;;  %v4384_v33 = vmul.bf16 %v3805_v9, %v108_v11  ;;  %v838_v44 = vld [vmem:[%s5573_s0 + $0x990] sm:$0xff] }
  0x5f   :  { %2554 = vmatpush1.bf16.msra.mxu0 %v1008_v60  ;;  %2036 = vmatprep.subr.bf16.mxu1 %v915_v61  ;;  %v643_v60 = vld [vmem:[%s5573_s0 + $0x378] sm:$0xff]  ;;  %v3009_v61 = vcombine.low %v4198_v5, %v4201_v6  ;;  %v197_v6 = vsub.s32 2, %v3677_v59  ;;  %v3027_v10 = vcombine.high %v4290_v49, %v4293_v50  ;;  %v3020_v42 = vcombine.low %v4278_v45, %v4281_v46  ;;  %v111_v46 = vld [vmem:[%s5575_s2 + $0x2c0] sm:$0xff]  ;;  %v650_v63 = vld [vmem:[%s5573_s0 + $0x3b0] sm:$0xff] }
  0x60   :  { %2555 = vmatprep.subr.bf16.mxu0 %v1011_v1  ;;  %v3015_v1 = vcombine.low %v4210_v13, %v4213_v14  ;;  %v835_v5 = vld [vmem:[%s5573_s0 + $0x978] sm:$0xff]  ;;  %v920_v13 = vpack.c.bf16 %v638_v53, %v636_v52  ;;  %v1016_v14 = vpack.c.bf16 %v830_v57, %v828_v54  ;;  %v1021_v43 = vpack.c.bf16 %v839_v30, %v837_v29  ;;  %v841_v52 = vld [vmem:[%s5573_s0 + $0x9a8] sm:$0xff]  ;;  %v842_v3 = vld [vmem:[%s5573_s0 + $0x9b0] sm:$0xff] }
  0x61   :  { %v3032_v45 = vcombine.high %v4363_v24, %v4366_v25  ;;  %v843_v53 = vld [vmem:[%s5573_s0 + $0x9b8] sm:$0xff]  ;;  %v120_v57 = vld [vmem:[%s5575_s2 + $0x304] sm:$0xff] }
  0x62   :  { %2037 = vmatpush1.bf16.msra.mxu1 %v914_v15  ;;  %v923_v15 = vpack.c.bf16 %v643_v60, %v641_v58  ;;  %v1020_v60 = vpack.c.bf16 %v838_v44, %v836_v39  ;;  %v657_v29 = vld [vmem:[%s5573_s0 + $0x3e8] sm:$0xff]  ;;  %v659_v30 = vld [vmem:[%s5573_s0 + $0x3f8] sm:$0xff]  ;;  %v850_v44 = vld [vmem:[%s5573_s0 + $0x9f0] sm:$0xff] }
  0x63   :  { %2556 = vmatpush1.bf16.msra.mxu0 %v1010_v16  ;;  %2038 = vmatprep.subr.bf16.mxu1 %v917_v17  ;;  %v640_v16 = vld [vmem:[%s5573_s0 + $0x360] sm:$0xff]  ;;  %v184_v17 = vld [vmem:[%s5574_s1 + $0x8] sm:$0x7]  ;;  %v931_v39 = vpack.c.bf16 %v659_v30, %v657_v29 }
  0x64   :  { %1922 = vmatmul.mubr.bf16.gmra.mrb[16].mxu1 %v2998_v21  ;;  %2557 = vmatprep.subr.bf16.mxu0 %v1013_v22  ;;  %v222_v21 = vrot.slane %v184_v17, %v3704_v8  ;;  %v226_v22 = vrot.slane %v184_v17, %v193_v12  ;;  %v4360_v23 = vrot.slane %v184_v17, %v197_v6  ;;  %v647_v12 = vld [vmem:[%s5573_s0 + $0x398] sm:$0xff]  ;;  %v4582_v29 = vld [vmem:[%s5574_s1] sm:$0xff] }
  0x65   :  { %2441 = vmatmul.mubr.bf16.gmra.mrb[16].mxu0 %v3004_v26  ;;  %1931 = vmatprep.mubr.bf16.mxu1 %v3010_v27  ;;  %v1019_v26 = vpack.c.bf16 %v835_v5, %v833_v4  ;;  %v645_v27 = vld [vmem:[%s5573_s0 + $0x388] sm:$0xff]  ;;  %v922_v34 = vpack.c.bf16 %v642_v18, %v640_v16  ;;  %v655_v5 = vld [vmem:[%s5573_s0 + $0x3d8] sm:$0xff]  ;;  %v4468_v16 = vmul.bf16 %v3805_v9, %v120_v57 }
  0x66   :  { %2450 = vmatprep.mubr.bf16.mxu0 %v3016_v31  ;;  %2039 = vmatpush1.bf16.msra.mxu1 %v916_v35  ;;  %v250_v31 = vpack.c.bf16 %v222_v21, %v222_v21  ;;  %v251_v32 = vpack.c.bf16 %v226_v22, %v226_v22  ;;  %v1018_v35 = vpack.c.bf16 %v834_v20, %v832_v19  ;;  %v653_v4 = vld [vmem:[%s5573_s0 + $0x3c8] sm:$0xff]  ;;  %v652_v20 = vld [vmem:[%s5573_s0 + $0x3c0] sm:$0xff]  ;;  %v654_v21 = vld [vmem:[%s5573_s0 + $0x3d0] sm:$0xff] }
  0x67   :  { %2558 = vmatpush1.bf16.msra.mxu0 %v1012_v36  ;;  %2040 = vmatprep.subr.bf16.mxu1 %v919_v37  ;;  %v925_v36 = vpack.c.bf16 %v647_v12, %v645_v27  ;;  %v644_v37 = vld [vmem:[%s5573_s0 + $0x380] sm:$0xff]  ;;  %v926_v17 = vpack.c.bf16 %v650_v63, %v648_v62  ;;  %v929_v19 = vpack.c.bf16 %v655_v5, %v653_v4  ;;  %v846_v12 = vld [vmem:[%s5573_s0 + $0x9d0] sm:$0xff] }
  0x68   :  { %2559 = vmatprep.subr.bf16.mxu0 %v1015_v41  ;;  %v310_v40 = vpack.i.b16 %v250_v31, %v250_v31  ;;  %v317_v41 = vpack.i.b16 %v251_v32, %v251_v32  ;;  %v924_v58 = vpack.c.bf16 %v646_v38, %v644_v37  ;;  %v844_v22 = vld [vmem:[%s5573_s0 + $0x9c0] sm:$0xff]  ;;  %v3037_v31 = vcombine.low %v4375_v28, %v4384_v33  ;;  %v849_v32 = vld [vmem:[%s5573_s0 + $0x9e8] sm:$0xff]  ;;  %v135_v62 = vld [vmem:[%s5575_s2 + $0x370] sm:$0xff] }
  0x69   :  { %v928_v37 = vpack.c.bf16 %v654_v21, %v652_v20  ;;  %v1024_v38 = vpack.c.bf16 %v846_v12, %v844_v22  ;;  %v141_v63 = vld [vmem:[%s5575_s2 + $0x39c] sm:$0xff]  ;;  %v201_v22 = vsub.s32 3, %v3677_v59  ;;  %v198_v30 = vrot.slane %v4582_v29, %v197_v6  ;;  %v168_v6 = vld [vmem:[%s5575_s2 + $0x464] sm:$0xff] }
  0x6a   :  { %2041 = vmatpush1.bf16.msra.mxu1 %v918_v51  ;;  %v3026_v51 = vcombine.low %v4290_v49, %v4293_v50  ;;  %v315_v54 = vrot.slane %v310_v40, %v3704_v8  ;;  %v3038_v49 = vcombine.high %v4375_v28, %v4384_v33  ;;  %v117_v50 = vld [vmem:[%s5575_s2 + $0x2ec] sm:$0xff]  ;;  %v129_v28 = vld [vmem:[%s5575_s2 + $0x344] sm:$0xff]  ;;  %v490_v4 = vmul.bf16 %v3803_v7, %v141_v63 }
  0x6b   :  { %2560 = vmatpush1.bf16.msra.mxu0 %v1014_v55  ;;  %2042 = vmatprep.subr.bf16.mxu1 %v921_v56  ;;  %v322_v55 = vrot.slane %v317_v41, %v3704_v8  ;;  %v114_v56 = vld [vmem:[%s5575_s2 + $0x2d8] sm:$0xff]  ;;  %v4456_v11 = vmul.bf16 %v3803_v7, %v117_v50  ;;  %v126_v33 = vld [vmem:[%s5575_s2 + $0x330] sm:$0xff]  ;;  %v656_v40 = vld [vmem:[%s5573_s0 + $0x3e0] sm:$0xff] }
  0x6c   :  { %1932 = vmatmul.mubr.bf16.gmra.mrb[20].mxu1 %v3009_v61  ;;  %2561 = vmatprep.subr.bf16.mxu0 %v1017_v0  ;;  %v927_v61 = vpack.c.bf16 %v651_v48, %v649_v47  ;;  %v840_v0 = vld [vmem:[%s5573_s0 + $0x9a0] sm:$0xff]  ;;  %v658_v41 = vld [vmem:[%s5573_s0 + $0x3f0] sm:$0xff]  ;;  %v661_v47 = vld [vmem:[%s5573_s0 + $0x408] sm:$0xff] }
  0x6d   :  { %2451 = vmatmul.mubr.bf16.gmra.mrb[20].mxu0 %v3015_v1  ;;  %1941 = vmatprep.mubr.bf16.mxu1 %v3021_v2  ;;  %v4441_v1 = vcombine.low %v315_v54, %v322_v55  ;;  %v1023_v2 = vpack.c.bf16 %v843_v53, %v841_v52  ;;  %v1022_v18 = vpack.c.bf16 %v842_v3, %v840_v0  ;;  %v663_v48 = vld [vmem:[%s5573_s0 + $0x418] sm:$0xff]  ;;  %v138_v0 = vld [vmem:[%s5575_s2 + $0x388] sm:$0xff] }
  0x6e   :  { %2460 = vmatprep.mubr.bf16.mxu0 %v3027_v10  ;;  %2043 = vmatpush1.bf16.msra.mxu1 %v920_v13  ;;  %v4453_v10 = vmul.bf16 %v3803_v7, %v111_v46  ;;  %v845_v13 = vld [vmem:[%s5573_s0 + $0x9c8] sm:$0xff]  ;;  %v855_v52 = vld [vmem:[%s5573_s0 + $0xa18] sm:$0xff]  ;;  %v475_v53 = vmul.bf16 %v3805_v9, %v126_v33  ;;  %v930_v55 = vpack.c.bf16 %v658_v41, %v656_v40 }
  0x6f   :  { %2562 = vmatpush1.bf16.msra.mxu0 %v1016_v14  ;;  %2044 = vmatprep.subr.bf16.mxu1 %v923_v15  ;;  %v847_v14 = vld [vmem:[%s5573_s0 + $0x9d8] sm:$0xff]  ;;  %v4465_v15 = vmul.bf16 %v3805_v9, %v114_v56  ;;  %v853_v46 = vld [vmem:[%s5573_s0 + $0xa08] sm:$0xff]  ;;  %v933_v50 = vpack.c.bf16 %v663_v48, %v661_v47  ;;  %v484_v3 = vmul.bf16 %v3803_v7, %v135_v62 }
  0x70   :  { %2563 = vmatprep.subr.bf16.mxu0 %v1019_v26  ;;  %v3031_v26 = vcombine.low %v4363_v24, %v4366_v25  ;;  %v1025_v27 = vpack.c.bf16 %v847_v14, %v845_v13  ;;  %v3043_v24 = vcombine.high %v4453_v10, %v4456_v11  ;;  %v123_v25 = vld [vmem:[%s5575_s2 + $0x318] sm:$0xff]  ;;  %v3042_v56 = vcombine.low %v4453_v10, %v4456_v11  ;;  %v16_v63 = vld [vmem:[%s5575_s2 + $0x8] sm:$0xff] }
  0x71   :  { %v1029_v57 = vpack.c.bf16 %v855_v52, %v853_v46  ;;  %v487_v5 = vmul.bf16 %v3805_v9, %v138_v0  ;;  %v3065_v14 = vcombine.high %v484_v3, %v490_v4  ;;  %v3064_v12 = vcombine.low %v484_v3, %v490_v4  ;;  %v174_v46 = vld [vmem:[%s5575_s2 + $0x490] sm:$0xff]  ;;  %v180_v52 = vld [vmem:[%s5575_s2 + $0x4bc] sm:$0xff] }
  0x72   :  { %2045 = vmatpush1.bf16.msra.mxu1 %v922_v34  ;;  %v851_v34 = vld [vmem:[%s5573_s0 + $0x9f8] sm:$0xff]  ;;  %v244_v33 = vpack.c.bf16 %v198_v30, %v198_v30  ;;  %v517_v40 = vmul.bf16 %v3805_v9, %v168_v6  ;;  %v19_v0 = vld [vmem:[%s5575_s2 + $0x20] sm:$0xff] }
  0x73   :  { %2564 = vmatpush1.bf16.msra.mxu0 %v1018_v35  ;;  %2046 = vmatprep.subr.bf16.mxu1 %v925_v36  ;;  %v3049_v35 = vcombine.high %v4465_v15, %v4468_v16  ;;  %v132_v36 = vld [vmem:[%s5575_s2 + $0x35c] sm:$0xff]  ;;  %v368_v4 = vmul.bf16 %v4441_v1, %v19_v0 }
  0x74   :  { %1942 = vmatmul.mubr.bf16.gmra.mrb[24].mxu1 %v3020_v42  ;;  %2565 = vmatprep.subr.bf16.mxu0 %v1021_v43  ;;  %v848_v42 = vld [vmem:[%s5573_s0 + $0x9e0] sm:$0xff]  ;;  %v1027_v43 = vpack.c.bf16 %v851_v34, %v849_v32  ;;  %v481_v54 = vmul.bf16 %v3805_v9, %v132_v36  ;;  %v667_v30 = vld [vmem:[%s5573_s0 + $0x438] sm:$0xff] }
  0x75   :  { %2461 = vmatmul.mubr.bf16.gmra.mrb[24].mxu0 %v3026_v51  ;;  %1951 = vmatprep.mubr.bf16.mxu1 %v3032_v45  ;;  %v472_v51 = vmul.bf16 %v3803_v7, %v123_v25  ;;  %v478_v45 = vmul.bf16 %v3803_v7, %v129_v28  ;;  %v202_v25 = vrot.slane %v4582_v29, %v201_v22  ;;  %v159_v34 = vld [vmem:[%s5575_s2 + $0x420] sm:$0xff]  ;;  %v162_v28 = vld [vmem:[%s5575_s2 + $0x438] sm:$0xff] }
  0x76   :  { %2470 = vmatprep.mubr.bf16.mxu0 %v3038_v49  ;;  %2047 = vmatpush1.bf16.msra.mxu1 %v924_v58  ;;  %v1026_v49 = vpack.c.bf16 %v850_v44, %v848_v42  ;;  %v3048_v58 = vcombine.low %v4465_v15, %v4468_v16  ;;  %v3059_v13 = vcombine.low %v475_v53, %v481_v54  ;;  %v147_v16 = vld [vmem:[%s5575_s2 + $0x3c8] sm:$0xff]  ;;  %v675_v0 = vld [vmem:[%s5573_s0 + $0x478] sm:$0xff] }
  0x77   :  { %2566 = vmatpush1.bf16.msra.mxu0 %v1020_v60  ;;  %2048 = vmatprep.subr.bf16.mxu1 %v927_v61  ;;  %v3054_v60 = vcombine.high %v472_v51, %v478_v45  ;;  %v3060_v61 = vcombine.high %v475_v53, %v481_v54  ;;  %v3053_v11 = vcombine.low %v472_v51, %v478_v45  ;;  %v171_v51 = vld [vmem:[%s5575_s2 + $0x478] sm:$0xff]  ;;  %v177_v45 = vld [vmem:[%s5575_s2 + $0x4a4] sm:$0xff] }
  0x78   :  { %2567 = vmatprep.subr.bf16.mxu0 %v1023_v2  ;;  %v144_v2 = vld [vmem:[%s5575_s2 + $0x3b4] sm:$0xff]  ;;  %v496_v20 = vmul.bf16 %v3803_v7, %v147_v16  ;;  %v508_v36 = vmul.bf16 %v3803_v7, %v159_v34  ;;  %v268_v42 = vpack.i.b16 %v244_v33, %v244_v33  ;;  %v520_v54 = vmul.bf16 %v3803_v7, %v171_v51  ;;  %v34_v16 = vld [vmem:[%s5575_s2 + $0x8c] sm:$0xff] }
  0x79   :  { %v493_v10 = vmul.bf16 %v3805_v9, %v144_v2  ;;  %v666_v34 = vld [vmem:[%s5573_s0 + $0x430] sm:$0xff]  ;;  %v671_v33 = vld [vmem:[%s5573_s0 + $0x458] sm:$0xff] }
  0x7a   :  { %2049 = vmatpush1.bf16.msra.mxu1 %v926_v17  ;;  %v153_v17 = vld [vmem:[%s5575_s2 + $0x3f4] sm:$0xff]  ;;  %v273_v53 = vrot.slane %v268_v42, %v3704_v8 }
  0x7b   :  { %2568 = vmatpush1.bf16.msra.mxu0 %v1022_v18  ;;  %2050 = vmatprep.subr.bf16.mxu1 %v929_v19  ;;  %v3071_v15 = vcombine.high %v487_v5, %v493_v10  ;;  %v150_v18 = vld [vmem:[%s5575_s2 + $0x3e0] sm:$0xff]  ;;  %v156_v19 = vld [vmem:[%s5575_s2 + $0x40c] sm:$0xff]  ;;  %v502_v21 = vmul.bf16 %v3803_v7, %v153_v17  ;;  %v31_v17 = vld [vmem:[%s5575_s2 + $0x78] sm:$0xff] }
  0x7c   :  { %1952 = vmatmul.mubr.bf16.gmra.mrb[28].mxu1 %v3031_v26  ;;  %2569 = vmatprep.subr.bf16.mxu0 %v1025_v27  ;;  %v499_v26 = vmul.bf16 %v3805_v9, %v150_v18  ;;  %v505_v27 = vmul.bf16 %v3805_v9, %v156_v19  ;;  %v37_v18 = vld [vmem:[%s5575_s2 + $0xa4] sm:$0xff]  ;;  %v43_v42 = vld [vmem:[%s5575_s2 + $0xd0] sm:$0xff] }
  0x7d   :  { %2471 = vmatmul.mubr.bf16.gmra.mrb[28].mxu0 %v3037_v31  ;;  %1961 = vmatprep.mubr.bf16.mxu1 %v3043_v24  ;;  %v3070_v31 = vcombine.low %v487_v5, %v493_v10  ;;  %v3076_v24 = vcombine.high %v496_v20, %v502_v21  ;;  %v3075_v41 = vcombine.low %v496_v20, %v502_v21  ;;  %v660_v19 = vld [vmem:[%s5573_s0 + $0x400] sm:$0xff]  ;;  %v662_v20 = vld [vmem:[%s5573_s0 + $0x410] sm:$0xff] }
  0x7e   :  { %2480 = vmatprep.mubr.bf16.mxu0 %v3049_v35  ;;  %2051 = vmatpush1.bf16.msra.mxu1 %v928_v37  ;;  %v3082_v32 = vcombine.high %v499_v26, %v505_v27  ;;  %v165_v35 = vld [vmem:[%s5575_s2 + $0x44c] sm:$0xff]  ;;  %v852_v21 = vld [vmem:[%s5573_s0 + $0xa00] sm:$0xff]  ;;  %v932_v6 = vpack.c.bf16 %v662_v20, %v660_v19  ;;  %v61_v20 = vld [vmem:[%s5575_s2 + $0x154] sm:$0xff] }
  0x7f   :  { %2570 = vmatpush1.bf16.msra.mxu0 %v1024_v38  ;;  %2052 = vmatprep.subr.bf16.mxu1 %v931_v39  ;;  %v514_v37 = vmul.bf16 %v3803_v7, %v165_v35  ;;  %v245_v38 = vpack.c.bf16 %v202_v25, %v202_v25  ;;  %v511_v39 = vmul.bf16 %v3805_v9, %v162_v28  ;;  %v669_v35 = vld [vmem:[%s5573_s0 + $0x448] sm:$0xff]  ;;  %v858_v51 = vld [vmem:[%s5573_s0 + $0xa30] sm:$0xff] }
  0x80   :  { %2571 = vmatprep.subr.bf16.mxu0 %v1027_v43  ;;  %v3081_v43 = vcombine.low %v499_v26, %v505_v27  ;;  %v854_v27 = vld [vmem:[%s5573_s0 + $0xa10] sm:$0xff]  ;;  %v55_v19 = vld [vmem:[%s5575_s2 + $0x128] sm:$0xff] }
  0x81   :  { %v3087_v44 = vcombine.high %v508_v36, %v514_v37  ;;  %v275_v47 = vpack.i.b16 %v245_v38, %v245_v38  ;;  %v3093_v48 = vcombine.high %v511_v39, %v517_v40  ;;  %v1028_v38 = vpack.c.bf16 %v854_v27, %v852_v21  ;;  %v677_v21 = vld [vmem:[%s5573_s0 + $0x488] sm:$0xff] }
  0x82   :  { %2053 = vmatpush1.bf16.msra.mxu1 %v930_v55  ;;  %v526_v55 = vmul.bf16 %v3803_v7, %v177_v45  ;;  %v22_v7 = vld [vmem:[%s5575_s2 + $0x34] sm:$0xff] }
  0x83   :  { %2572 = vmatpush1.bf16.msra.mxu0 %v1026_v49  ;;  %2195 = vmatprep.subr.bf16.mxu1 %v933_v50  ;;  %v280_v49 = vrot.slane %v275_v47, %v3704_v8  ;;  %v523_v50 = vmul.bf16 %v3805_v9, %v174_v46  ;;  %v49_v47 = vld [vmem:[%s5575_s2 + $0xfc] sm:$0xff] }
  0x84   :  { %1962 = vmatmul.mubr.bf16.gmra.mrb[32].mxu1 %v3042_v56  ;;  %2714 = vmatprep.subr.bf16.mxu0 %v1029_v57  ;;  %v529_v56 = vmul.bf16 %v3805_v9, %v180_v52  ;;  %v3086_v57 = vcombine.low %v508_v36, %v514_v37  ;;  %v25_v9 = vld [vmem:[%s5575_s2 + $0x4c] sm:$0xff]  ;;  %v3097_v10 = vcombine.low %v520_v54, %v526_v55  ;;  %v859_v37 = vld [vmem:[%s5573_s0 + $0xa38] sm:$0xff] }
  0x85   :  { %2481 = vmatmul.mubr.bf16.gmra.mrb[32].mxu0 %v3048_v58  ;;  %1971 = vmatprep.mubr.bf16.mxu1 %v3054_v60  ;;  %v3092_v58 = vcombine.low %v511_v39, %v517_v40  ;;  %v3098_v60 = vcombine.high %v520_v54, %v526_v55  ;;  %v374_v5 = vmul.bf16 %v4441_v1, %v25_v9  ;;  %v857_v36 = vld [vmem:[%s5573_s0 + $0xa28] sm:$0xff]  ;;  %v40_v40 = vld [vmem:[%s5575_s2 + $0xb8] sm:$0xff]  ;;  %v860_v9 = vld [vmem:[%s5573_s0 + $0xa40] sm:$0xff] }
  0x86   :  { %2490 = vmatprep.mubr.bf16.mxu0 %v3060_v61  ;;  %v4622_v61 = vcombine.low %v273_v53, %v280_v49  ;;  %v3104_v62 = vcombine.high %v523_v50, %v529_v56  ;;  %v1031_v46 = vpack.c.bf16 %v859_v37, %v857_v36  ;;  %v861_v52 = vld [vmem:[%s5573_s0 + $0xa48] sm:$0xff]  ;;  %v863_v53 = vld [vmem:[%s5573_s0 + $0xa58] sm:$0xff]  ;;  %v937_v54 = vpack.c.bf16 %v671_v33, %v669_v35 }
  0x87   :  { %v2962_v28 = vcombine.low %v368_v4, %v374_v5  ;;  %v681_v37 = vld [vmem:[%s5573_s0 + $0x4a8] sm:$0xff] }
  0x88   :  { %v365_v2 = vmul.bf16 %v4622_v61, %v16_v63  ;;  %v371_v3 = vmul.bf16 %v4622_v61, %v22_v7  ;;  %v4665_v26 = vmul.bf16 %v4622_v61, %v34_v16  ;;  %v4729_v55 = vmul.bf16 %v4622_v61, %v40_v40  ;;  %v52_v16 = vld [vmem:[%s5575_s2 + $0x110] sm:$0xff] }
  0x89   :  { %v1033_v63 = vpack.c.bf16 %v863_v53, %v861_v52  ;;  %v685_v52 = vld [vmem:[%s5573_s0 + $0x4c8] sm:$0xff]  ;;  %v687_v53 = vld [vmem:[%s5573_s0 + $0x4d8] sm:$0xff] }
  0x8a   :  { %v2956_v25 = vcombine.low %v365_v2, %v371_v3 }
  0x8c   :  { %1972 = vmatmul.mubr.bf16.gmra.mrb[36].mxu1 %v3053_v11  ;;  %v3103_v11 = vcombine.low %v523_v50, %v529_v56  ;;  %v4735_v50 = vmul.bf16 %v4441_v1, %v43_v42  ;;  %v4738_v56 = vmul.bf16 %v4441_v1, %v49_v47  ;;  %v67_v47 = vld [vmem:[%s5575_s2 + $0x180] sm:$0xff] }
  0x8d   :  { %2491 = vmatmul.mubr.bf16.gmra.mrb[36].mxu0 %v3059_v13  ;;  %1981 = vmatprep.mubr.bf16.mxu1 %v3065_v14  ;;  %v2957_v13 = vcombine.high %v365_v2, %v371_v3  ;;  %v2963_v14 = vcombine.high %v368_v4, %v374_v5  ;;  %v862_v2 = vld [vmem:[%s5573_s0 + $0xa50] sm:$0xff]  ;;  %v672_v5 = vld [vmem:[%s5573_s0 + $0x460] sm:$0xff] }
  0x8e   :  { %2500 = vmatprep.mubr.bf16.mxu0 %v3071_v15  ;;  %v28_v15 = vld [vmem:[%s5575_s2 + $0x60] sm:$0xff] }
  0x8f   :  { %v4662_v22 = vmul.bf16 %v4622_v61, %v28_v15  ;;  %v674_v15 = vld [vmem:[%s5573_s0 + $0x470] sm:$0xff] }
  0x91   :  { %v2968_v39 = vcombine.high %v4662_v22, %v4665_v26  ;;  %v2967_v7 = vcombine.low %v4662_v22, %v4665_v26  ;;  %v1032_v22 = vpack.c.bf16 %v862_v2, %v860_v9  ;;  %v679_v26 = vld [vmem:[%s5573_s0 + $0x498] sm:$0xff] }
  0x92   :  { %v941_v35 = vpack.c.bf16 %v679_v26, %v677_v21 }
  0x94   :  { %1982 = vmatmul.mubr.bf16.gmra.mrb[40].mxu1 %v3064_v12  ;;  %v665_v12 = vld [vmem:[%s5573_s0 + $0x428] sm:$0xff] }
  0x95   :  { %2501 = vmatmul.mubr.bf16.gmra.mrb[40].mxu0 %v3070_v31  ;;  %1991 = vmatprep.mubr.bf16.mxu1 %v3076_v24  ;;  %v4677_v31 = vmul.bf16 %v4441_v1, %v31_v17  ;;  %v4680_v24 = vmul.bf16 %v4441_v1, %v37_v18  ;;  %v58_v17 = vld [vmem:[%s5575_s2 + $0x13c] sm:$0xff] }
  0x96   :  { %2510 = vmatprep.mubr.bf16.mxu0 %v3082_v32  ;;  %v664_v32 = vld [vmem:[%s5573_s0 + $0x420] sm:$0xff] }
  0x97   :  { %v934_v45 = vpack.c.bf16 %v666_v34, %v664_v32  ;;  %v2973_v3 = vcombine.low %v4677_v31, %v4680_v24  ;;  %v404_v32 = vmul.bf16 %v4441_v1, %v55_v19  ;;  %v410_v34 = vmul.bf16 %v4441_v1, %v61_v20 }
  0x9c   :  { %1992 = vmatmul.mubr.bf16.gmra.mrb[44].mxu1 %v3075_v41  ;;  %v46_v41 = vld [vmem:[%s5575_s2 + $0xe4] sm:$0xff] }
  0x9d   :  { %2511 = vmatmul.mubr.bf16.gmra.mrb[44].mxu0 %v3081_v43  ;;  %2001 = vmatprep.mubr.bf16.mxu1 %v3087_v44  ;;  %v935_v43 = vpack.c.bf16 %v667_v30, %v665_v12  ;;  %v2974_v44 = vcombine.high %v4677_v31, %v4680_v24  ;;  %v4732_v49 = vmul.bf16 %v4622_v61, %v46_v41  ;;  %v864_v12 = vld [vmem:[%s5573_s0 + $0xa60] sm:$0xff]  ;;  %v866_v30 = vld [vmem:[%s5573_s0 + $0xa70] sm:$0xff] }
  0x9e   :  { %2520 = vmatprep.mubr.bf16.mxu0 %v3093_v48  ;;  %v856_v48 = vld [vmem:[%s5573_s0 + $0xa20] sm:$0xff]  ;;  %v4803_v31 = vmul.bf16 %v4622_v61, %v52_v16  ;;  %v407_v24 = vmul.bf16 %v4622_v61, %v58_v17  ;;  %v1034_v33 = vpack.c.bf16 %v866_v30, %v864_v12  ;;  %v2996_v41 = vcombine.high %v404_v32, %v410_v34  ;;  %v693_v16 = vld [vmem:[%s5573_s0 + $0x508] sm:$0xff]  ;;  %v695_v17 = vld [vmem:[%s5573_s0 + $0x518] sm:$0xff] }
  0x9f   :  { %v2979_v4 = vcombine.high %v4729_v55, %v4732_v49  ;;  %v2978_v36 = vcombine.low %v4729_v55, %v4732_v49  ;;  %v416_v49 = vmul.bf16 %v4441_v1, %v67_v47  ;;  %v949_v26 = vpack.c.bf16 %v695_v17, %v693_v16  ;;  %v694_v12 = vld [vmem:[%s5573_s0 + $0x510] sm:$0xff]  ;;  %v713_v17 = vld [vmem:[%s5573_s0 + $0x5a8] sm:$0xff] }
  0xa0   :  { %v2990_v40 = vcombine.high %v4803_v31, %v407_v24 }
  0xa4   :  { %2002 = vmatmul.mubr.bf16.gmra.mrb[48].mxu1 %v3086_v57  ;;  %v1030_v57 = vpack.c.bf16 %v858_v51, %v856_v48  ;;  %v73_v48 = vld [vmem:[%s5575_s2 + $0x1ac] sm:$0xff] }
  0xa5   :  { %2521 = vmatmul.mubr.bf16.gmra.mrb[48].mxu0 %v3092_v58  ;;  %2011 = vmatprep.mubr.bf16.mxu1 %v3098_v60  ;;  %v668_v58 = vld [vmem:[%s5573_s0 + $0x440] sm:$0xff]  ;;  %v670_v60 = vld [vmem:[%s5573_s0 + $0x450] sm:$0xff] }
  0xa6   :  { %2530 = vmatprep.mubr.bf16.mxu0 %v3104_v62  ;;  %v673_v62 = vld [vmem:[%s5573_s0 + $0x468] sm:$0xff] }
  0xa7   :  { %v939_v18 = vpack.c.bf16 %v675_v0, %v673_v62  ;;  %v2989_v62 = vcombine.low %v4803_v31, %v407_v24  ;;  %v2995_v0 = vcombine.low %v404_v32, %v410_v34  ;;  %v697_v31 = vld [vmem:[%s5573_s0 + $0x528] sm:$0xff]  ;;  %v699_v24 = vld [vmem:[%s5573_s0 + $0x538] sm:$0xff] }
  0xac   :  { %2012 = vmatmul.mubr.bf16.gmra.mrb[52].mxu1 %v3097_v10  ;;  %v865_v10 = vld [vmem:[%s5573_s0 + $0xa68] sm:$0xff] }
  0xad   :  { %2531 = vmatmul.mubr.bf16.gmra.mrb[52].mxu0 %v3103_v11  ;;  %2054 = vmatprep.mubr.bf16.mxu1 %v2957_v13  ;;  %v867_v11 = vld [vmem:[%s5573_s0 + $0xa78] sm:$0xff]  ;;  %v936_v13 = vpack.c.bf16 %v670_v60, %v668_v58  ;;  %v684_v58 = vld [vmem:[%s5573_s0 + $0x4c0] sm:$0xff]  ;;  %v686_v60 = vld [vmem:[%s5573_s0 + $0x4d0] sm:$0xff] }
  0xae   :  { %2573 = vmatprep.mubr.bf16.mxu0 %v2963_v14  ;;  %v2985_v14 = vcombine.high %v4735_v50, %v4738_v56  ;;  %v1035_v27 = vpack.c.bf16 %v867_v11, %v865_v10  ;;  %v944_v10 = vpack.c.bf16 %v686_v60, %v684_v58  ;;  %v85_v11 = vld [vmem:[%s5575_s2 + $0x204] sm:$0xff] }
  0xaf   :  { %v434_v21 = vmul.bf16 %v4441_v1, %v85_v11  ;;  %v103_v58 = vld [vmem:[%s5575_s2 + $0x288] sm:$0xff] }
  0xb4   :  { %2055 = vmatmul.mubr.bf16.vlgmr.msra.gmra.mrb[0].mxu1 %v2956_v25  ;;  %v938_v25 = vpack.c.bf16 %v674_v15, %v672_v5  ;;  %v79_v5 = vld [vmem:[%s5575_s2 + $0x1d8] sm:$0xff]  ;;  %v690_v15 = vld [vmem:[%s5573_s0 + $0x4f0] sm:$0xff] }
  0xb5   :  { %2574 = vmatmul.mubr.bf16.vlgmr.msra.gmra.mrb[0].mxu0 %v2962_v28  ;;  %2196 = vmatpush1.bf16.msra.mxu1 %v932_v6  ;;  %v676_v28 = vld [vmem:[%s5573_s0 + $0x480] sm:$0xff]  ;;  %v678_v6 = vld [vmem:[%s5573_s0 + $0x490] sm:$0xff]  ;;  %v428_v20 = vmul.bf16 %v4441_v1, %v79_v5  ;;  %v452_v5 = vmul.bf16 %v4441_v1, %v103_v58 }
  0xb6   :  { %2715 = vmatpush1.bf16.msra.mxu0 %v1028_v38  ;;  %2064 = vmatprep.mubr.bf16.mxu1 %v2968_v39  ;;  %v683_v38 = vld [vmem:[%s5573_s0 + $0x4b8] sm:$0xff]  ;;  %v2984_v39 = vcombine.low %v4735_v50, %v4738_v56  ;;  %v940_v42 = vpack.c.bf16 %v678_v6, %v676_v28  ;;  %v422_v50 = vmul.bf16 %v4441_v1, %v73_v48  ;;  %v94_v28 = vld [vmem:[%s5575_s2 + $0x244] sm:$0xff]  ;;  %v91_v6 = vld [vmem:[%s5575_s2 + $0x230] sm:$0xff] }
  0xb7   :  { %2197 = vmatprep.subr.bf16.mxu1 %v935_v43  ;;  %2583 = vmatprep.mubr.bf16.mxu0 %v2974_v44  ;;  %v64_v43 = vld [vmem:[%s5575_s2 + $0x168] sm:$0xff]  ;;  %v70_v44 = vld [vmem:[%s5575_s2 + $0x194] sm:$0xff]  ;;  %v943_v51 = vpack.c.bf16 %v683_v38, %v681_v37  ;;  %v3018_v34 = vcombine.high %v428_v20, %v434_v21  ;;  %v951_v37 = vpack.c.bf16 %v699_v24, %v697_v31  ;;  %v696_v38 = vld [vmem:[%s5573_s0 + $0x520] sm:$0xff] }
  0xb8   :  { %2716 = vmatprep.subr.bf16.mxu0 %v1031_v46  ;;  %v682_v46 = vld [vmem:[%s5573_s0 + $0x4b0] sm:$0xff]  ;;  %v419_v55 = vmul.bf16 %v4622_v61, %v70_v44  ;;  %v3007_v2 = vcombine.high %v416_v49, %v422_v50  ;;  %v440_v44 = vmul.bf16 %v4441_v1, %v91_v6  ;;  %v712_v24 = vld [vmem:[%s5573_s0 + $0x5a0] sm:$0xff] }
  0xb9   :  { %2198 = vmatpush1.bf16.msra.mxu1 %v934_v45  ;;  %v680_v45 = vld [vmem:[%s5573_s0 + $0x4a0] sm:$0xff] }
  0xba   :  { %2199 = vmatprep.subr.bf16.mxu1 %v937_v54  ;;  %2717 = vmatpush1.bf16.msra.mxu0 %v1030_v57  ;;  %v413_v54 = vmul.bf16 %v4622_v61, %v64_v43  ;;  %v942_v56 = vpack.c.bf16 %v682_v46, %v680_v45  ;;  %v945_v57 = vpack.c.bf16 %v687_v53, %v685_v52  ;;  %v700_v45 = vld [vmem:[%s5573_s0 + $0x540] sm:$0xff]  ;;  %v702_v46 = vld [vmem:[%s5573_s0 + $0x550] sm:$0xff]  ;;  %v705_v53 = vld [vmem:[%s5573_s0 + $0x568] sm:$0xff] }
  0xbb   :  { %2718 = vmatprep.subr.bf16.mxu0 %v1033_v63  ;;  %v689_v63 = vld [vmem:[%s5573_s0 + $0x4e8] sm:$0xff]  ;;  %v443_v43 = vmul.bf16 %v4622_v61, %v94_v28  ;;  %v952_v60 = vpack.c.bf16 %v702_v46, %v700_v45  ;;  %v127_v45 = vld [vmem:[%s5575_s2 + $0x338] sm:$0xff] }
  0xbc   :  { %2065 = vmatmul.mubr.bf16.gmra.mrb[4].mxu1 %v2967_v7  ;;  %v691_v7 = vld [vmem:[%s5573_s0 + $0x4f8] sm:$0xff]  ;;  %v3001_v9 = vcombine.high %v413_v54, %v419_v55  ;;  %v3000_v30 = vcombine.low %v413_v54, %v419_v55  ;;  %v3017_v55 = vcombine.low %v428_v20, %v434_v21 }
  0xbd   :  { %2584 = vmatmul.mubr.bf16.gmra.mrb[4].mxu0 %v2973_v3  ;;  %2074 = vmatprep.mubr.bf16.mxu1 %v2979_v4  ;;  %v76_v3 = vld [vmem:[%s5575_s2 + $0x1c0] sm:$0xff]  ;;  %v82_v4 = vld [vmem:[%s5575_s2 + $0x1ec] sm:$0xff]  ;;  %v707_v54 = vld [vmem:[%s5573_s0 + $0x578] sm:$0xff] }
  0xbe   :  { %2200 = vmatpush1.bf16.msra.mxu1 %v936_v13  ;;  %2593 = vmatprep.mubr.bf16.mxu0 %v2985_v14  ;;  %v947_v13 = vpack.c.bf16 %v691_v7, %v689_v63  ;;  %v688_v14 = vld [vmem:[%s5573_s0 + $0x4e0] sm:$0xff]  ;;  %v431_v19 = vmul.bf16 %v4622_v61, %v82_v4  ;;  %v955_v63 = vpack.c.bf16 %v707_v54, %v705_v53 }
  0xbf   :  { %2201 = vmatprep.subr.bf16.mxu1 %v939_v18  ;;  %2719 = vmatpush1.bf16.msra.mxu0 %v1032_v22  ;;  %v425_v18 = vmul.bf16 %v4622_v61, %v76_v3  ;;  %v946_v22 = vpack.c.bf16 %v690_v15, %v688_v14  ;;  %v704_v7 = vld [vmem:[%s5573_s0 + $0x560] sm:$0xff]  ;;  %v710_v15 = vld [vmem:[%s5573_s0 + $0x590] sm:$0xff] }
  0xc0   :  { %2720 = vmatprep.subr.bf16.mxu0 %v1035_v27  ;;  %v692_v27 = vld [vmem:[%s5573_s0 + $0x500] sm:$0xff] }
  0xc1   :  { %v3012_v32 = vcombine.high %v425_v18, %v431_v19  ;;  %v3011_v52 = vcombine.low %v425_v18, %v431_v19  ;;  %v708_v14 = vld [vmem:[%s5573_s0 + $0x580] sm:$0xff]  ;;  %v715_v18 = vld [vmem:[%s5573_s0 + $0x5b8] sm:$0xff] }
  0xc2   :  { %2202 = vmatpush1.bf16.msra.mxu1 %v938_v25  ;;  %v3006_v25 = vcombine.low %v416_v49, %v422_v50  ;;  %v959_v31 = vpack.c.bf16 %v715_v18, %v713_v17  ;;  %v720_v54 = vld [vmem:[%s5573_s0 + $0x5e0] sm:$0xff]  ;;  %v148_v17 = vld [vmem:[%s5575_s2 + $0x3d0] sm:$0xff] }
  0xc3   :  { %2203 = vmatprep.subr.bf16.mxu1 %v941_v35  ;;  %2721 = vmatpush1.bf16.msra.mxu0 %v1034_v33  ;;  %v88_v35 = vld [vmem:[%s5575_s2 + $0x218] sm:$0xff]  ;;  %v948_v33 = vpack.c.bf16 %v694_v12, %v692_v27  ;;  %v115_v27 = vld [vmem:[%s5575_s2 + $0x2e0] sm:$0xff]  ;;  %v956_v12 = vpack.c.bf16 %v710_v15, %v708_v14 }
  0xc4   :  { %2075 = vmatmul.mubr.bf16.gmra.mrb[8].mxu1 %v2978_v36  ;;  %v97_v36 = vld [vmem:[%s5575_s2 + $0x25c] sm:$0xff]  ;;  %v464_v6 = vmul.bf16 %v4441_v1, %v115_v27  ;;  %v209_v27 = vsub.s32 5, %v3677_v59 }
  0xc5   :  { %2594 = vmatmul.mubr.bf16.gmra.mrb[8].mxu0 %v2984_v39  ;;  %2084 = vmatprep.mubr.bf16.mxu1 %v2990_v40  ;;  %v698_v39 = vld [vmem:[%s5573_s0 + $0x530] sm:$0xff]  ;;  %v701_v40 = vld [vmem:[%s5573_s0 + $0x548] sm:$0xff]  ;;  %v446_v47 = vmul.bf16 %v4441_v1, %v97_v36  ;;  %v154_v18 = vld [vmem:[%s5575_s2 + $0x3fc] sm:$0xff] }
  0xc6   :  { %2603 = vmatprep.mubr.bf16.mxu0 %v2996_v41  ;;  %2204 = vmatpush1.bf16.msra.mxu1 %v940_v42  ;;  %v703_v41 = vld [vmem:[%s5573_s0 + $0x558] sm:$0xff]  ;;  %v437_v42 = vmul.bf16 %v4622_v61, %v88_v35  ;;  %v950_v48 = vpack.c.bf16 %v698_v39, %v696_v38  ;;  %v716_v38 = vld [vmem:[%s5573_s0 + $0x5c0] sm:$0xff]  ;;  %v718_v39 = vld [vmem:[%s5573_s0 + $0x5d0] sm:$0xff] }
  0xc7   :  { %2205 = vmatprep.subr.bf16.mxu1 %v943_v51  ;;  %v953_v51 = vpack.c.bf16 %v703_v41, %v701_v40  ;;  %v3029_v50 = vcombine.high %v440_v44, %v446_v47  ;;  %v3028_v19 = vcombine.low %v440_v44, %v446_v47  ;;  %v721_v41 = vld [vmem:[%s5573_s0 + $0x5e8] sm:$0xff]  ;;  %v960_v46 = vpack.c.bf16 %v718_v39, %v716_v38 }
  0xc8   :  { %v3023_v49 = vcombine.high %v437_v42, %v443_v43  ;;  %v3022_v16 = vcombine.low %v437_v42, %v443_v43  ;;  %v723_v42 = vld [vmem:[%s5573_s0 + $0x5f8] sm:$0xff] }
  0xc9   :  { %v963_v53 = vpack.c.bf16 %v723_v42, %v721_v41 }
  0xca   :  { %2206 = vmatpush1.bf16.msra.mxu1 %v942_v56  ;;  %v100_v56 = vld [vmem:[%s5575_s2 + $0x270] sm:$0xff] }
  0xcb   :  { %2207 = vmatprep.subr.bf16.mxu1 %v945_v57  ;;  %v106_v57 = vld [vmem:[%s5575_s2 + $0x29c] sm:$0xff]  ;;  %v449_v3 = vmul.bf16 %v4622_v61, %v100_v56  ;;  %v476_v56 = vmul.bf16 %v4441_v1, %v127_v45  ;;  %v178_v45 = vld [vmem:[%s5575_s2 + $0x4ac] sm:$0xff] }
  0xcc   :  { %2085 = vmatmul.mubr.bf16.gmra.mrb[12].mxu1 %v2989_v62  ;;  %v109_v62 = vld [vmem:[%s5575_s2 + $0x2b4] sm:$0xff]  ;;  %v455_v4 = vmul.bf16 %v4622_v61, %v106_v57 }
  0xcd   :  { %2604 = vmatmul.mubr.bf16.gmra.mrb[12].mxu0 %v2995_v0  ;;  %2094 = vmatprep.mubr.bf16.mxu1 %v3001_v9  ;;  %v706_v0 = vld [vmem:[%s5573_s0 + $0x570] sm:$0xff]  ;;  %v709_v9 = vld [vmem:[%s5573_s0 + $0x588] sm:$0xff] }
  0xce   :  { %2613 = vmatprep.mubr.bf16.mxu0 %v3007_v2  ;;  %2208 = vmatpush1.bf16.msra.mxu1 %v944_v10  ;;  %v711_v2 = vld [vmem:[%s5573_s0 + $0x598] sm:$0xff]  ;;  %v458_v10 = vmul.bf16 %v4441_v1, %v109_v62  ;;  %v954_v11 = vpack.c.bf16 %v706_v0, %v704_v7  ;;  %v3034_v20 = vcombine.high %v449_v3, %v455_v4 }
  0xcf   :  { %2209 = vmatprep.subr.bf16.mxu1 %v947_v13  ;;  %v957_v13 = vpack.c.bf16 %v711_v2, %v709_v9  ;;  %v3033_v40 = vcombine.low %v449_v3, %v455_v4  ;;  %v136_v0 = vld [vmem:[%s5575_s2 + $0x378] sm:$0xff]  ;;  %v142_v9 = vld [vmem:[%s5575_s2 + $0x3a4] sm:$0xff]  ;;  %v139_v2 = vld [vmem:[%s5575_s2 + $0x390] sm:$0xff] }
  0xd0   :  { %v3040_v21 = vcombine.high %v452_v5, %v458_v10  ;;  %v3039_v43 = vcombine.low %v452_v5, %v458_v10  ;;  %v145_v3 = vld [vmem:[%s5575_s2 + $0x3bc] sm:$0xff]  ;;  %v485_v4 = vmul.bf16 %v4622_v61, %v136_v0  ;;  %v491_v5 = vmul.bf16 %v4622_v61, %v142_v9 }
  0xd1   :  { %v488_v10 = vmul.bf16 %v4441_v1, %v139_v2  ;;  %v23_v0 = vld [vmem:[%s5575_s2 + $0x3c] sm:$0xff] }
  0xd2   :  { %2210 = vmatpush1.bf16.msra.mxu1 %v946_v22  ;;  %v112_v22 = vld [vmem:[%s5575_s2 + $0x2c8] sm:$0xff]  ;;  %v3067_v15 = vcombine.high %v485_v4, %v491_v5 }
  0xd3   :  { %2211 = vmatprep.subr.bf16.mxu1 %v949_v26  ;;  %v118_v26 = vld [vmem:[%s5575_s2 + $0x2f4] sm:$0xff]  ;;  %v461_v35 = vmul.bf16 %v4622_v61, %v112_v22  ;;  %v503_v22 = vmul.bf16 %v4622_v61, %v154_v18 }
  0xd4   :  { %2095 = vmatmul.mubr.bf16.gmra.mrb[16].mxu1 %v3000_v30  ;;  %v121_v30 = vld [vmem:[%s5575_s2 + $0x30c] sm:$0xff]  ;;  %v467_v28 = vmul.bf16 %v4622_v61, %v118_v26  ;;  %v205_v26 = vsub.s32 4, %v3677_v59  ;;  %v166_v59 = vld [vmem:[%s5575_s2 + $0x454] sm:$0xff] }
  0xd5   :  { %2614 = vmatmul.mubr.bf16.gmra.mrb[16].mxu0 %v3006_v25  ;;  %2104 = vmatprep.mubr.bf16.mxu1 %v3012_v32  ;;  %v714_v25 = vld [vmem:[%s5573_s0 + $0x5b0] sm:$0xff]  ;;  %v717_v32 = vld [vmem:[%s5573_s0 + $0x5c8] sm:$0xff] }
  0xd6   :  { %2623 = vmatprep.mubr.bf16.mxu0 %v3018_v34  ;;  %2212 = vmatpush1.bf16.msra.mxu1 %v948_v33  ;;  %v719_v34 = vld [vmem:[%s5573_s0 + $0x5d8] sm:$0xff]  ;;  %v470_v33 = vmul.bf16 %v4441_v1, %v121_v30  ;;  %v958_v36 = vpack.c.bf16 %v714_v25, %v712_v24  ;;  %v3045_v44 = vcombine.high %v461_v35, %v467_v28 }
  0xd7   :  { %2213 = vmatprep.subr.bf16.mxu1 %v951_v37  ;;  %v961_v37 = vpack.c.bf16 %v719_v34, %v717_v32  ;;  %v160_v32 = vld [vmem:[%s5575_s2 + $0x428] sm:$0xff]  ;;  %v206_v34 = vrot.slane %v4582_v29, %v205_v26  ;;  %v32_v26 = vld [vmem:[%s5575_s2 + $0x80] sm:$0xf] }
  0xd8   :  { %v3051_v47 = vcombine.high %v464_v6, %v470_v33  ;;  %v3050_v62 = vcombine.low %v464_v6, %v470_v33  ;;  %v163_v6 = vld [vmem:[%s5575_s2 + $0x440] sm:$0xff]  ;;  %v169_v33 = vld [vmem:[%s5575_s2 + $0x46c] sm:$0xff] }
  0xd9   :  { %v512_v39 = vmul.bf16 %v4441_v1, %v163_v6  ;;  %v50_v6 = vld [vmem:[%s5575_s2 + $0x104] sm:$0xf] }
  0xda   :  { %2214 = vmatpush1.bf16.msra.mxu1 %v950_v48  ;;  %v124_v48 = vld [vmem:[%s5575_s2 + $0x320] sm:$0xff] }
  0xdb   :  { %2215 = vmatprep.subr.bf16.mxu1 %v953_v51  ;;  %v130_v51 = vld [vmem:[%s5575_s2 + $0x34c] sm:$0xff] }
  0xdc   :  { %2105 = vmatmul.mubr.bf16.gmra.mrb[20].mxu1 %v3011_v52  ;;  %v133_v52 = vld [vmem:[%s5575_s2 + $0x364] sm:$0xff] }
  0xdd   :  { %2624 = vmatmul.mubr.bf16.gmra.mrb[20].mxu0 %v3017_v55  ;;  %2114 = vmatprep.mubr.bf16.mxu1 %v3023_v49  ;;  %v722_v55 = vld [vmem:[%s5573_s0 + $0x5f0] sm:$0xff]  ;;  %v473_v49 = vmul.bf16 %v4622_v61, %v124_v48  ;;  %v482_v57 = vmul.bf16 %v4441_v1, %v133_v52  ;;  %v181_v52 = vld [vmem:[%s5575_s2 + $0x4c4] sm:$0xff] }
  0xde   :  { %2633 = vmatprep.mubr.bf16.mxu0 %v3029_v50  ;;  %2216 = vmatpush1.bf16.msra.mxu1 %v952_v60  ;;  %v479_v50 = vmul.bf16 %v4622_v61, %v130_v51  ;;  %v962_v58 = vpack.c.bf16 %v722_v55, %v720_v54  ;;  %v3044_v60 = vcombine.low %v461_v35, %v467_v28 }
  0xdf   :  { %2217 = vmatprep.subr.bf16.mxu1 %v955_v63  ;;  %v3062_v7 = vcombine.high %v476_v56, %v482_v57  ;;  %v3061_v14 = vcombine.low %v476_v56, %v482_v57  ;;  %v210_v35 = vrot.slane %v4582_v29, %v209_v27  ;;  %v515_v29 = vmul.bf16 %v4622_v61, %v166_v59  ;;  %v38_v27 = vld [vmem:[%s5575_s2 + $0xac] sm:$0xf]  ;;  %v44_v59 = vld [vmem:[%s5575_s2 + $0xd8] sm:$0xf] }
  0xe0   :  { %v3056_v63 = vcombine.high %v473_v49, %v479_v50  ;;  %v527_v55 = vmul.bf16 %v4622_v61, %v178_v45  ;;  %v530_v57 = vmul.bf16 %v4441_v1, %v181_v52 }
  0xe1   :  { %v247_v38 = vpack.c.bf16 %v210_v35, %v210_v35 }
  0xe2   :  { %2218 = vmatpush1.bf16.msra.mxu1 %v954_v11  ;;  %v494_v11 = vmul.bf16 %v4441_v1, %v145_v3 }
  0xe3   :  { %2219 = vmatprep.subr.bf16.mxu1 %v957_v13  ;;  %v3055_v13 = vcombine.low %v473_v49, %v479_v50  ;;  %v289_v48 = vpack.i.b16 %v247_v38, %v247_v38 }
  0xe4   :  { %2115 = vmatmul.mubr.bf16.gmra.mrb[24].mxu1 %v3022_v16  ;;  %v3073_v16 = vcombine.high %v488_v10, %v494_v11  ;;  %v3072_v24 = vcombine.low %v488_v10, %v494_v11  ;;  %v20_v11 = vld [vmem:[%s5575_s2 + $0x28] sm:$0xf] }
  0xe5   :  { %2634 = vmatmul.mubr.bf16.gmra.mrb[24].mxu0 %v3028_v19  ;;  %2124 = vmatprep.mubr.bf16.mxu1 %v3034_v20  ;;  %v151_v19 = vld [vmem:[%s5575_s2 + $0x3e8] sm:$0xff]  ;;  %v157_v20 = vld [vmem:[%s5575_s2 + $0x414] sm:$0xff]  ;;  %v294_v50 = vrot.slane %v289_v48, %v3704_v8  ;;  %v71_v48 = vld [vmem:[%s5575_s2 + $0x19c] sm:$0xff] }
  0xe6   :  { %2643 = vmatprep.mubr.bf16.mxu0 %v3040_v21  ;;  %2220 = vmatpush1.bf16.msra.mxu1 %v956_v12  ;;  %v497_v21 = vmul.bf16 %v4622_v61, %v148_v17  ;;  %v500_v12 = vmul.bf16 %v4441_v1, %v151_v19  ;;  %v506_v30 = vmul.bf16 %v4441_v1, %v157_v20  ;;  %v3404_v19 = vmov 0  }
  0xe7   :  { %2221 = vmatprep.subr.bf16.mxu1 %v959_v31  ;;  %v3066_v31 = vcombine.low %v485_v4, %v491_v5 }
  0xe8   :  { %v3078_v25 = vcombine.high %v497_v21, %v503_v22  ;;  %v3084_v28 = vcombine.high %v500_v12, %v506_v30  ;;  %v3077_v41 = vcombine.low %v497_v21, %v503_v22  ;;  %v3083_v42 = vcombine.low %v500_v12, %v506_v30  ;;  %v41_v12 = vld [vmem:[%s5575_s2 + $0xc0] sm:$0xff]  ;;  %v47_v30 = vld [vmem:[%s5575_s2 + $0xec] sm:$0xff] }
  0xea   :  { %2222 = vmatpush1.bf16.msra.mxu1 %v958_v36  ;;  %v509_v36 = vmul.bf16 %v4622_v61, %v160_v32 }
  0xeb   :  { %2223 = vmatprep.subr.bf16.mxu1 %v961_v37  ;;  %v246_v37 = vpack.c.bf16 %v206_v34, %v206_v34 }
  0xec   :  { %2125 = vmatmul.mubr.bf16.gmra.mrb[28].mxu1 %v3033_v40  ;;  %v518_v40 = vmul.bf16 %v4441_v1, %v169_v33  ;;  %v53_v33 = vld [vmem:[%s5575_s2 + $0x118] sm:$0xff] }
  0xed   :  { %2644 = vmatmul.mubr.bf16.gmra.mrb[28].mxu0 %v3039_v43  ;;  %2134 = vmatprep.mubr.bf16.mxu1 %v3045_v44  ;;  %v3089_v43 = vcombine.high %v509_v36, %v515_v29  ;;  %v172_v44 = vld [vmem:[%s5575_s2 + $0x480] sm:$0xff] }
  0xee   :  { %2653 = vmatprep.mubr.bf16.mxu0 %v3051_v47  ;;  %2224 = vmatpush1.bf16.msra.mxu1 %v960_v46  ;;  %v282_v47 = vpack.i.b16 %v246_v37, %v246_v37  ;;  %v3095_v51 = vcombine.high %v512_v39, %v518_v40  ;;  %v175_v46 = vld [vmem:[%s5575_s2 + $0x498] sm:$0xff]  ;;  %v521_v54 = vmul.bf16 %v4622_v61, %v172_v44  ;;  %v17_v61 = vld [vmem:[%s5575_s2 + $0x10] sm:$0xff] }
  0xef   :  { %2225 = vmatprep.subr.bf16.mxu1 %v963_v53  ;;  %v252_v53 = vpack.c.bf16 %v4360_v23, %v4360_v23  ;;  %v524_v56 = vmul.bf16 %v4441_v1, %v175_v46  ;;  %v62_v44 = vld [vmem:[%s5575_s2 + $0x15c] sm:$0xf] }
  0xf0   :  { %v287_v49 = vrot.slane %v282_v47, %v3704_v8  ;;  %v3100_v23 = vcombine.high %v521_v54, %v527_v55  ;;  %v3099_v4 = vcombine.low %v521_v54, %v527_v55  ;;  %v65_v47 = vld [vmem:[%s5575_s2 + $0x170] sm:$0xff] }
  0xf1   :  { %v3105_v5 = vcombine.low %v524_v56, %v530_v57 }
  0xf2   :  { %2226 = vmatpush1.bf16.msra.mxu1 %v962_v58  ;;  %v324_v58 = vpack.i.b16 %v252_v53, %v252_v53 }
  0xf4   :  { %2135 = vmatmul.mubr.bf16.gmra.mrb[32].mxu1 %v3044_v60  ;;  %v3088_v60 = vcombine.low %v509_v36, %v515_v29  ;;  %v329_v9 = vrot.slane %v324_v58, %v3704_v8  ;;  %v26_v8 = vld [vmem:[%s5575_s2 + $0x54] sm:$0xf]  ;;  %v59_v36 = vld [vmem:[%s5575_s2 + $0x144] sm:$0xff] }
  0xf5   :  { %2654 = vmatmul.mubr.bf16.gmra.mrb[32].mxu0 %v3050_v62  ;;  %2144 = vmatprep.mubr.bf16.mxu1 %v3056_v63  ;;  %v3094_v62 = vcombine.low %v512_v39, %v518_v40  ;;  %v5120_v63 = vcombine.low %v287_v49, %v294_v50  ;;  %v68_v49 = vld [vmem:[%s5575_s2 + $0x188] sm:$0xf]  ;;  %v74_v50 = vld [vmem:[%s5575_s2 + $0x1b4] sm:$0xf] }
  0xf6   :  { %2663 = vmatprep.mubr.bf16.mxu0 %v3062_v7  ;;  %v3106_v7 = vcombine.high %v524_v56, %v530_v57  ;;  %v5131_v3 = vcombine.low %v329_v9, %v329_v9  ;;  %v77_v56 = vld [vmem:[%s5575_s2 + $0x1c8] sm:$0xff]  ;;  %v83_v57 = vld [vmem:[%s5575_s2 + $0x1f4] sm:$0xff]  ;;  %v80_v9 = vld [vmem:[%s5575_s2 + $0x1e0] sm:$0xf] }
  0xf7   :  { %v366_v1 = vmul.bf16 %v5120_v63, %v17_v61  ;;  %v372_v2 = vmul.bf16 %v5120_v63, %v23_v0  ;;  %v396_v32 = vmul.bf16 %v5120_v63, %v47_v30  ;;  %v402_v38 = vmul.bf16 %v5120_v63, %v53_v33 }
  0xf8   :  { %v393_v29 = vmul.bf16 %v5131_v3, %v44_v59  ;;  %v399_v37 = vmul.bf16 %v5131_v3, %v50_v6  ;;  %v408_v39 = vmul.bf16 %v5120_v63, %v59_v36  ;;  %v411_v45 = vmul.bf16 %v5131_v3, %v62_v44 }
  0xf9   :  { %v2959_v10 = vcombine.high %v366_v1, %v372_v2  ;;  %v2958_v20 = vcombine.low %v366_v1, %v372_v2  ;;  %v414_v46 = vmul.bf16 %v5120_v63, %v65_v47  ;;  %v420_v52 = vmul.bf16 %v5120_v63, %v71_v48  ;;  %v86_v1 = vld [vmem:[%s5575_s2 + $0x20c] sm:$0xf]  ;;  %v89_v2 = vld [vmem:[%s5575_s2 + $0x220] sm:$0xff] }
  0xfa   :  { %v2991_v53 = vcombine.low %v402_v38, %v408_v39  ;;  %v417_v58 = vmul.bf16 %v5131_v3, %v68_v49 }
  0xfb   :  { %v3003_v55 = vcombine.high %v414_v46, %v420_v52 }
  0xfc   :  { %2145 = vmatmul.mubr.bf16.gmra.mrb[36].mxu1 %v3055_v13  ;;  %v29_v13 = vld [vmem:[%s5575_s2 + $0x68] sm:$0xff] }
  0xfd   :  { %2664 = vmatmul.mubr.bf16.gmra.mrb[36].mxu0 %v3061_v14  ;;  %2154 = vmatprep.mubr.bf16.mxu1 %v3067_v15  ;;  %v35_v14 = vld [vmem:[%s5575_s2 + $0x94] sm:$0xff]  ;;  %v369_v15 = vmul.bf16 %v5131_v3, %v20_v11  ;;  %v378_v17 = vmul.bf16 %v5120_v63, %v29_v13  ;;  %v438_v11 = vmul.bf16 %v5120_v63, %v89_v2 }
  0xfe   :  { %2673 = vmatprep.mubr.bf16.mxu0 %v3073_v16  ;;  %v375_v16 = vmul.bf16 %v5131_v3, %v26_v8  ;;  %v384_v18 = vmul.bf16 %v5120_v63, %v35_v14 }
 0x100   :  { %v2964_v21 = vcombine.low %v369_v15, %v375_v16  ;;  %v2970_v22 = vcombine.high %v378_v17, %v384_v18  ;;  %v2969_v34 = vcombine.low %v378_v17, %v384_v18  ;;  %v92_v16 = vld [vmem:[%s5575_s2 + $0x238] sm:$0xf]  ;;  %v98_v17 = vld [vmem:[%s5575_s2 + $0x264] sm:$0xf] }
 0x101   :  { %v101_v18 = vld [vmem:[%s5575_s2 + $0x278] sm:$0xff] }
 0x104   :  { %2155 = vmatmul.mubr.bf16.gmra.mrb[40].mxu1 %v3066_v31  ;;  %v381_v31 = vmul.bf16 %v5131_v3, %v32_v26  ;;  %v450_v26 = vmul.bf16 %v5120_v63, %v101_v18 }
 0x105   :  { %2674 = vmatmul.mubr.bf16.gmra.mrb[40].mxu0 %v3072_v24  ;;  %2164 = vmatprep.mubr.bf16.mxu1 %v3078_v25  ;;  %v387_v24 = vmul.bf16 %v5131_v3, %v38_v27  ;;  %v390_v25 = vmul.bf16 %v5120_v63, %v41_v12 }
 0x106   :  { %2683 = vmatprep.mubr.bf16.mxu0 %v3084_v28 }
 0x107   :  { %v2975_v35 = vcombine.low %v381_v31, %v387_v24  ;;  %v2981_v28 = vcombine.high %v390_v25, %v396_v32  ;;  %v2980_v40 = vcombine.low %v390_v25, %v396_v32  ;;  %v104_v24 = vld [vmem:[%s5575_s2 + $0x290] sm:$0xf]  ;;  %v110_v25 = vld [vmem:[%s5575_s2 + $0x2bc] sm:$0xf] }
 0x108   :  { %v113_v32 = vld [vmem:[%s5575_s2 + $0x2d0] sm:$0xff] }
 0x109   :  { %v462_v59 = vmul.bf16 %v5120_v63, %v113_v32 }
 0x10c   :  { %2165 = vmatmul.mubr.bf16.gmra.mrb[44].mxu1 %v3077_v41  ;;  %v2986_v41 = vcombine.low %v393_v29, %v399_v37  ;;  %v116_v37 = vld [vmem:[%s5575_s2 + $0x2e8] sm:$0xf] }
 0x10d   :  { %2684 = vmatmul.mubr.bf16.gmra.mrb[44].mxu0 %v3083_v42  ;;  %2174 = vmatprep.mubr.bf16.mxu1 %v3089_v43  ;;  %v2992_v42 = vcombine.high %v402_v38, %v408_v39  ;;  %v56_v43 = vld [vmem:[%s5575_s2 + $0x130] sm:$0xf]  ;;  %v122_v38 = vld [vmem:[%s5575_s2 + $0x314] sm:$0xf]  ;;  %v125_v39 = vld [vmem:[%s5575_s2 + $0x328] sm:$0xff] }
 0x10e   :  { %2693 = vmatprep.mubr.bf16.mxu0 %v3095_v51  ;;  %v405_v51 = vmul.bf16 %v5131_v3, %v56_v43  ;;  %v474_v43 = vmul.bf16 %v5120_v63, %v125_v39 }
 0x110   :  { %v2997_v54 = vcombine.low %v405_v51, %v411_v45  ;;  %v128_v45 = vld [vmem:[%s5575_s2 + $0x340] sm:$0xf] }
 0x114   :  { %2175 = vmatmul.mubr.bf16.gmra.mrb[48].mxu1 %v3088_v60  ;;  %v423_v60 = vmul.bf16 %v5131_v3, %v74_v50 }
 0x115   :  { %2694 = vmatmul.mubr.bf16.gmra.mrb[48].mxu0 %v3094_v62  ;;  %2184 = vmatprep.mubr.bf16.mxu1 %v3100_v23  ;;  %v426_v62 = vmul.bf16 %v5120_v63, %v77_v56  ;;  %v432_v23 = vmul.bf16 %v5120_v63, %v83_v57 }
 0x116   :  { %2703 = vmatprep.mubr.bf16.mxu0 %v3106_v7  ;;  %v3002_v7 = vcombine.low %v414_v46, %v420_v52  ;;  %v3008_v61 = vcombine.low %v417_v58, %v423_v60  ;;  %v134_v46 = vld [vmem:[%s5575_s2 + $0x36c] sm:$0xf]  ;;  %v137_v52 = vld [vmem:[%s5575_s2 + $0x380] sm:$0xff]  ;;  %v140_v60 = vld [vmem:[%s5575_s2 + $0x398] sm:$0xf] }
 0x117   :  { %v3014_v0 = vcombine.high %v426_v62, %v432_v23  ;;  %v3013_v13 = vcombine.low %v426_v62, %v432_v23  ;;  %v486_v49 = vmul.bf16 %v5120_v63, %v137_v52  ;;  %v146_v62 = vld [vmem:[%s5575_s2 + $0x3c4] sm:$0xf]  ;;  %v149_v23 = vld [vmem:[%s5575_s2 + $0x3d8] sm:$0xff] }
 0x11c   :  { %2185 = vmatmul.mubr.bf16.gmra.mrb[52].mxu1 %v3099_v4  ;;  %v95_v4 = vld [vmem:[%s5575_s2 + $0x24c] sm:$0xff] }
 0x11d   :  { %2704 = vmatmul.mubr.bf16.gmra.mrb[52].mxu0 %v3105_v5  ;;  %2227 = vmatprep.mubr.bf16.mxu1 %v2959_v10  ;;  %v429_v5 = vmul.bf16 %v5131_v3, %v80_v9  ;;  %v435_v10 = vmul.bf16 %v5131_v3, %v86_v1  ;;  %v444_v8 = vmul.bf16 %v5120_v63, %v95_v4 }
 0x11e   :  { %2746 = vmatprep.mubr.bf16.mxu0 %v3404_v19  ;;  %v498_v9 = vmul.bf16 %v5120_v63, %v149_v23 }
 0x11f   :  { %v3019_v14 = vcombine.low %v429_v5, %v435_v10  ;;  %v3025_v15 = vcombine.high %v438_v11, %v444_v8  ;;  %v3024_v12 = vcombine.low %v438_v11, %v444_v8  ;;  %v152_v10 = vld [vmem:[%s5575_s2 + $0x3f0] sm:$0xf]  ;;  %v158_v11 = vld [vmem:[%s5575_s2 + $0x41c] sm:$0xf] }
 0x120   :  { %v161_v8 = vld [vmem:[%s5575_s2 + $0x430] sm:$0xff] }
 0x124   :  { %2228 = vmatmul.mubr.bf16.vlgmr.msra.gmra.mrb[0].mxu1 %v2958_v20  ;;  %v107_v20 = vld [vmem:[%s5575_s2 + $0x2a4] sm:$0xff] }
 0x125   :  { %3108 = vmatmul.mubr.msk.bf16.vlgmr.msra.gmra.mrb[0].mxu0 %vm1806_vm0, %v2964_v21  ;;  %2237 = vmatprep.mubr.bf16.mxu1 %v2970_v22  ;;  %v441_v21 = vmul.bf16 %v5131_v3, %v92_v16  ;;  %v447_v22 = vmul.bf16 %v5131_v3, %v98_v17  ;;  %v456_v27 = vmul.bf16 %v5120_v63, %v107_v20 }
 0x126   :  { %2756 = vmatprep.mubr.bf16.mxu0 %v3404_v19  ;;  %v510_v16 = vmul.bf16 %v5120_v63, %v161_v8 }
 0x127   :  { %v3030_v30 = vcombine.low %v441_v21, %v447_v22  ;;  %v3036_v31 = vcombine.high %v450_v26, %v456_v27  ;;  %v3035_v33 = vcombine.low %v450_v26, %v456_v27  ;;  %v164_v22 = vld [vmem:[%s5575_s2 + $0x448] sm:$0xf]  ;;  %v170_v26 = vld [vmem:[%s5575_s2 + $0x474] sm:$0xf] }
 0x128   :  { %v173_v27 = vld [vmem:[%s5575_s2 + $0x488] sm:$0xff] }
 0x12c   :  { %2238 = vmatmul.mubr.bf16.gmra.mrb[4].mxu1 %v2969_v34  ;;  %v119_v34 = vld [vmem:[%s5575_s2 + $0x2fc] sm:$0xff] }
 0x12d   :  { %3109 = vmatmul.mubr.msk.bf16.gmra.mrb[4].mxu0 %vm1806_vm0, %v2975_v35  ;;  %2247 = vmatprep.mubr.bf16.mxu1 %v2981_v28  ;;  %v453_v35 = vmul.bf16 %v5131_v3, %v104_v24  ;;  %v459_v28 = vmul.bf16 %v5131_v3, %v110_v25  ;;  %v468_v6 = vmul.bf16 %v5120_v63, %v119_v34 }
 0x12e   :  { %2766 = vmatprep.mubr.bf16.mxu0 %v3404_v19  ;;  %v522_v24 = vmul.bf16 %v5120_v63, %v173_v27 }
 0x12f   :  { %v3041_v36 = vcombine.low %v453_v35, %v459_v28  ;;  %v3047_v29 = vcombine.high %v462_v59, %v468_v6  ;;  %v3046_v47 = vcombine.low %v462_v59, %v468_v6  ;;  %v176_v28 = vld [vmem:[%s5575_s2 + $0x4a0] sm:$0xf]  ;;  %v182_v59 = vld [vmem:[%s5575_s2 + $0x4cc] sm:$0xf] }
 0x130   :  { %v525_v6 = vmul.bf16 %v5131_v3, %v176_v28 }
 0x134   :  { %2248 = vmatmul.mubr.bf16.gmra.mrb[8].mxu1 %v2980_v40  ;;  %v131_v40 = vld [vmem:[%s5575_s2 + $0x354] sm:$0xff] }
 0x135   :  { %3110 = vmatmul.mubr.msk.bf16.gmra.mrb[8].mxu0 %vm1806_vm0, %v2986_v41  ;;  %2257 = vmatprep.mubr.bf16.mxu1 %v2992_v42  ;;  %v465_v41 = vmul.bf16 %v5131_v3, %v116_v37  ;;  %v471_v42 = vmul.bf16 %v5131_v3, %v122_v38  ;;  %v480_v44 = vmul.bf16 %v5120_v63, %v131_v40 }
 0x136   :  { %2776 = vmatprep.mubr.bf16.mxu0 %v3404_v19 }
 0x137   :  { %v3052_v48 = vcombine.low %v465_v41, %v471_v42  ;;  %v3058_v51 = vcombine.high %v474_v43, %v480_v44  ;;  %v3057_v56 = vcombine.low %v474_v43, %v480_v44 }
 0x13c   :  { %2258 = vmatmul.mubr.bf16.gmra.mrb[12].mxu1 %v2991_v53  ;;  %v143_v53 = vld [vmem:[%s5575_s2 + $0x3ac] sm:$0xff] }
 0x13d   :  { %3111 = vmatmul.mubr.msk.bf16.gmra.mrb[12].mxu0 %vm1806_vm0, %v2997_v54  ;;  %2267 = vmatprep.mubr.bf16.mxu1 %v3003_v55  ;;  %v477_v54 = vmul.bf16 %v5131_v3, %v128_v45  ;;  %v483_v55 = vmul.bf16 %v5131_v3, %v134_v46  ;;  %v492_v50 = vmul.bf16 %v5120_v63, %v143_v53 }
 0x13e   :  { %2786 = vmatprep.mubr.bf16.mxu0 %v3404_v19 }
 0x13f   :  { %v3063_v57 = vcombine.low %v477_v54, %v483_v55  ;;  %v3069_v58 = vcombine.high %v486_v49, %v492_v50  ;;  %v3068_v2 = vcombine.low %v486_v49, %v492_v50 }
 0x144   :  { %2268 = vmatmul.mubr.bf16.gmra.mrb[16].mxu1 %v3002_v7  ;;  %v155_v7 = vld [vmem:[%s5575_s2 + $0x404] sm:$0xff] }
 0x145   :  { %3112 = vmatmul.mubr.msk.bf16.gmra.mrb[16].mxu0 %vm1806_vm0, %v3008_v61  ;;  %2277 = vmatprep.mubr.bf16.mxu1 %v3014_v0  ;;  %v489_v61 = vmul.bf16 %v5131_v3, %v140_v60  ;;  %v495_v0 = vmul.bf16 %v5131_v3, %v146_v62  ;;  %v504_v1 = vmul.bf16 %v5120_v63, %v155_v7 }
 0x146   :  { %2796 = vmatprep.mubr.bf16.mxu0 %v3404_v19 }
 0x147   :  { %v3074_v4 = vcombine.low %v489_v61, %v495_v0  ;;  %v3080_v5 = vcombine.high %v498_v9, %v504_v1  ;;  %v3079_v18 = vcombine.low %v498_v9, %v504_v1 }
 0x14c   :  { %2278 = vmatmul.mubr.bf16.gmra.mrb[20].mxu1 %v3013_v13  ;;  %v167_v13 = vld [vmem:[%s5575_s2 + $0x45c] sm:$0xff] }
 0x14d   :  { %3113 = vmatmul.mubr.msk.bf16.gmra.mrb[20].mxu0 %vm1806_vm0, %v3019_v14  ;;  %2287 = vmatprep.mubr.bf16.mxu1 %v3025_v15  ;;  %v501_v14 = vmul.bf16 %v5131_v3, %v152_v10  ;;  %v507_v15 = vmul.bf16 %v5131_v3, %v158_v11  ;;  %v516_v17 = vmul.bf16 %v5120_v63, %v167_v13 }
 0x14e   :  { %2806 = vmatprep.mubr.bf16.mxu0 %v3404_v19 }
 0x14f   :  { %v3085_v20 = vcombine.low %v501_v14, %v507_v15  ;;  %v3091_v21 = vcombine.high %v510_v16, %v516_v17  ;;  %v3090_v32 = vcombine.low %v510_v16, %v516_v17 }
 0x154   :  { %2288 = vmatmul.mubr.bf16.gmra.mrb[24].mxu1 %v3024_v12  ;;  %v179_v12 = vld [vmem:[%s5575_s2 + $0x4b4] sm:$0xff] }
 0x155   :  { %3114 = vmatmul.mubr.msk.bf16.gmra.mrb[24].mxu0 %vm1806_vm0, %v3030_v30  ;;  %2297 = vmatprep.mubr.bf16.mxu1 %v3036_v31  ;;  %v513_v30 = vmul.bf16 %v5131_v3, %v164_v22  ;;  %v519_v31 = vmul.bf16 %v5131_v3, %v170_v26  ;;  %v528_v25 = vmul.bf16 %v5120_v63, %v179_v12 }
 0x156   :  { %2816 = vmatprep.mubr.bf16.mxu0 %v3404_v19  ;;  %v531_v63 = vmul.bf16 %v5131_v3, %v182_v59 }
 0x157   :  { %v3096_v34 = vcombine.low %v513_v30, %v519_v31  ;;  %v3102_v35 = vcombine.high %v522_v24, %v528_v25 }
 0x15c   :  { %2298 = vmatmul.mubr.bf16.gmra.mrb[28].mxu1 %v3035_v33  ;;  %v3101_v33 = vcombine.low %v522_v24, %v528_v25 }
 0x15d   :  { %3115 = vmatmul.mubr.msk.bf16.gmra.mrb[28].mxu0 %vm1806_vm0, %v3041_v36  ;;  %2307 = vmatprep.mubr.bf16.mxu1 %v3047_v29  ;;  %v3107_v36 = vcombine.low %v525_v6, %v531_v63 }
 0x15e   :  { %2826 = vmatprep.mubr.bf16.mxu0 %v3404_v19 }
 0x164   :  { %2308 = vmatmul.mubr.bf16.gmra.mrb[32].mxu1 %v3046_v47 }
 0x165   :  { %3116 = vmatmul.mubr.msk.bf16.gmra.mrb[32].mxu0 %vm1806_vm0, %v3052_v48  ;;  %2317 = vmatprep.mubr.bf16.mxu1 %v3058_v51 }
 0x166   :  { %2836 = vmatprep.mubr.bf16.mxu0 %v3404_v19 }
 0x16c   :  { %2318 = vmatmul.mubr.bf16.gmra.mrb[36].mxu1 %v3057_v56 }
 0x16d   :  { %3117 = vmatmul.mubr.msk.bf16.gmra.mrb[36].mxu0 %vm1806_vm0, %v3063_v57  ;;  %2327 = vmatprep.mubr.bf16.mxu1 %v3069_v58 }
 0x16e   :  { %2846 = vmatprep.mubr.bf16.mxu0 %v3404_v19 }
 0x174   :  { %2328 = vmatmul.mubr.bf16.gmra.mrb[40].mxu1 %v3068_v2 }
 0x175   :  { %3118 = vmatmul.mubr.msk.bf16.gmra.mrb[40].mxu0 %vm1806_vm0, %v3074_v4  ;;  %2337 = vmatprep.mubr.bf16.mxu1 %v3080_v5 }
 0x176   :  { %2856 = vmatprep.mubr.bf16.mxu0 %v3404_v19 }
 0x17c   :  { %2338 = vmatmul.mubr.bf16.gmra.mrb[44].mxu1 %v3079_v18 }
 0x17d   :  { %3119 = vmatmul.mubr.msk.bf16.gmra.mrb[44].mxu0 %vm1806_vm0, %v3085_v20  ;;  %2347 = vmatprep.mubr.bf16.mxu1 %v3091_v21 }
 0x17e   :  { %2866 = vmatprep.mubr.bf16.mxu0 %v3404_v19 }
 0x184   :  { %2348 = vmatmul.mubr.bf16.gmra.mrb[48].mxu1 %v3090_v32 }
 0x185   :  { %3120 = vmatmul.mubr.msk.bf16.gmra.mrb[48].mxu0 %vm1806_vm0, %v3096_v34  ;;  %2357 = vmatprep.mubr.bf16.mxu1 %v3102_v35 }
 0x186   :  { %2876 = vmatprep.mubr.bf16.mxu0 %v3404_v19 }
 0x18c   :  { %2358 = vmatmul.mubr.bf16.gmra.mrb[52].mxu1 %v3101_v33 }
 0x18d   :  { %3121 = vmatmul.mubr.msk.bf16.gmra.mrb[52].mxu0 %vm1806_vm0, %v3107_v36 }
 0x1f7   :  { %v2229_v29 = vpop.f32.mrb[0].mxu1 }
 0x1f8   :  { %v2748_v37 = vpop.f32.mrb[0].mxu0  ;;  %v2231_v38 = vpop.f32.mrb[1].mxu1 }
 0x1f9   :  { %v3122_v39 = vadd.f32 %v2748_v37, %v2229_v29  ;;  %v2750_v40 = vpop.f32.mrb[1].mxu0  ;;  %v2233_v41 = vpop.f32.mrb[2].mxu1 }
 0x1fa   :  { %v3123_v42 = vadd.f32 %v2750_v40, %v2231_v38  ;;  %v2752_v43 = vpop.f32.mrb[2].mxu0  ;;  %v2235_v44 = vpop.f32.mrb[3].mxu1 }
 0x1fb   :  { %2887 = vst [vmem:[%s5576_s3] sm:$0xff] %v3122_v39  ;;  %v3124_v3 = vadd.f32 %v2752_v43, %v2233_v41  ;;  %v2754_v19 = vpop.f32.mrb[3].mxu0 }
 0x1fc   :  { %2889 = vst.msk [vmem:[%s5576_s3 + $0x8] sm:$0xff] %vm2888_vm1, %v3123_v42  ;;  %v3125_v47 = vadd.f32 %v2754_v19, %v2235_v44 }
 0x1fd   :  { %2890 = vst [vmem:[%s5576_s3 + $0x10] sm:$0xff] %v3124_v3 }
 0x1fe   :  { %2891 = vst.msk [vmem:[%s5576_s3 + $0x18] sm:$0xff] %vm2888_vm1, %v3125_v47 }
 0x1ff   :  { %v2239_v48 = vpop.f32.mrb[4].mxu1 }
 0x200   :  { %v2758_v51 = vpop.f32.mrb[4].mxu0  ;;  %v2241_v45 = vpop.f32.mrb[5].mxu1 }
 0x201   :  { %v3126_v46 = vadd.f32 %v2758_v51, %v2239_v48  ;;  %v2760_v52 = vpop.f32.mrb[5].mxu0  ;;  %v2243_v53 = vpop.f32.mrb[6].mxu1 }
 0x202   :  { %v3127_v54 = vadd.f32 %v2760_v52, %v2241_v45  ;;  %v2762_v55 = vpop.f32.mrb[6].mxu0  ;;  %v2245_v49 = vpop.f32.mrb[7].mxu1 }
 0x203   :  { %2892 = vst [vmem:[%s5576_s3 + $0x20] sm:$0xff] %v3126_v46  ;;  %v3128_v50 = vadd.f32 %v2762_v55, %v2243_v53  ;;  %v2764_v56 = vpop.f32.mrb[7].mxu0 }
 0x204   :  { %2893 = vst.msk [vmem:[%s5576_s3 + $0x28] sm:$0xff] %vm2888_vm1, %v3127_v54  ;;  %v3129_v57 = vadd.f32 %v2764_v56, %v2245_v49 }
 0x205   :  { %2894 = vst [vmem:[%s5576_s3 + $0x30] sm:$0xff] %v3128_v50 }
 0x206   :  { %2895 = vst.msk [vmem:[%s5576_s3 + $0x38] sm:$0xff] %vm2888_vm1, %v3129_v57 }
 0x207   :  { %v2249_v58 = vpop.f32.mrb[8].mxu1 }
 0x208   :  { %v2768_v60 = vpop.f32.mrb[8].mxu0  ;;  %v2251_v62 = vpop.f32.mrb[9].mxu1 }
 0x209   :  { %v3130_v23 = vadd.f32 %v2768_v60, %v2249_v58  ;;  %v2770_v7 = vpop.f32.mrb[9].mxu0  ;;  %v2253_v61 = vpop.f32.mrb[10].mxu1 }
 0x20a   :  { %v3131_v0 = vadd.f32 %v2770_v7, %v2251_v62  ;;  %v2772_v9 = vpop.f32.mrb[10].mxu0  ;;  %v2255_v1 = vpop.f32.mrb[11].mxu1 }
 0x20b   :  { %2896 = vst [vmem:[%s5576_s3 + $0x40] sm:$0xff] %v3130_v23  ;;  %v3132_v2 = vadd.f32 %v2772_v9, %v2253_v61  ;;  %v2774_v4 = vpop.f32.mrb[11].mxu0 }
 0x20c   :  { %2897 = vst.msk [vmem:[%s5576_s3 + $0x48] sm:$0xff] %vm2888_vm1, %v3131_v0  ;;  %v3133_v5 = vadd.f32 %v2774_v4, %v2255_v1 }
 0x20d   :  { %2898 = vst [vmem:[%s5576_s3 + $0x50] sm:$0xff] %v3132_v2 }
 0x20e   :  { %2899 = vst.msk [vmem:[%s5576_s3 + $0x58] sm:$0xff] %vm2888_vm1, %v3133_v5 }
 0x20f   :  { %v2259_v10 = vpop.f32.mrb[12].mxu1 }
 0x210   :  { %v2778_v11 = vpop.f32.mrb[12].mxu0  ;;  %v2261_v8 = vpop.f32.mrb[13].mxu1 }
 0x211   :  { %v3134_v13 = vadd.f32 %v2778_v11, %v2259_v10  ;;  %v2780_v14 = vpop.f32.mrb[13].mxu0  ;;  %v2263_v15 = vpop.f32.mrb[14].mxu1 }
 0x212   :  { %v3135_v16 = vadd.f32 %v2780_v14, %v2261_v8  ;;  %v2782_v17 = vpop.f32.mrb[14].mxu0  ;;  %v2265_v18 = vpop.f32.mrb[15].mxu1 }
 0x213   :  { %2900 = vst [vmem:[%s5576_s3 + $0x60] sm:$0xff] %v3134_v13  ;;  %v3136_v20 = vadd.f32 %v2782_v17, %v2263_v15  ;;  %v2784_v21 = vpop.f32.mrb[15].mxu0 }
 0x214   :  { %2901 = vst.msk [vmem:[%s5576_s3 + $0x68] sm:$0xff] %vm2888_vm1, %v3135_v16  ;;  %v3137_v22 = vadd.f32 %v2784_v21, %v2265_v18 }
 0x215   :  { %2902 = vst [vmem:[%s5576_s3 + $0x70] sm:$0xff] %v3136_v20 }
 0x216   :  { %2903 = vst.msk [vmem:[%s5576_s3 + $0x78] sm:$0xff] %vm2888_vm1, %v3137_v22 }
 0x217   :  { %v2269_v26 = vpop.f32.mrb[16].mxu1 }
 0x218   :  { %v2788_v27 = vpop.f32.mrb[16].mxu0  ;;  %v2271_v12 = vpop.f32.mrb[17].mxu1 }
 0x219   :  { %v3138_v30 = vadd.f32 %v2788_v27, %v2269_v26  ;;  %v2790_v31 = vpop.f32.mrb[17].mxu0  ;;  %v2273_v24 = vpop.f32.mrb[18].mxu1 }
 0x21a   :  { %v3139_v25 = vadd.f32 %v2790_v31, %v2271_v12  ;;  %v2792_v32 = vpop.f32.mrb[18].mxu0  ;;  %v2275_v34 = vpop.f32.mrb[19].mxu1 }
 0x21b   :  { %2904 = vst [vmem:[%s5576_s3 + $0x80] sm:$0xff] %v3138_v30  ;;  %v3140_v35 = vadd.f32 %v2792_v32, %v2273_v24  ;;  %v2794_v28 = vpop.f32.mrb[19].mxu0 }
 0x21c   :  { %2905 = vst.msk [vmem:[%s5576_s3 + $0x88] sm:$0xff] %vm2888_vm1, %v3139_v25  ;;  %v3141_v59 = vadd.f32 %v2794_v28, %v2275_v34 }
 0x21d   :  { %2906 = vst [vmem:[%s5576_s3 + $0x90] sm:$0xff] %v3140_v35 }
 0x21e   :  { %2907 = vst.msk [vmem:[%s5576_s3 + $0x98] sm:$0xff] %vm2888_vm1, %v3141_v59 }
 0x21f   :  { %v2279_v6 = vpop.f32.mrb[20].mxu1 }
 0x220   :  { %v2798_v63 = vpop.f32.mrb[20].mxu0  ;;  %v2281_v33 = vpop.f32.mrb[21].mxu1 }
 0x221   :  { %v3142_v36 = vadd.f32 %v2798_v63, %v2279_v6  ;;  %v2800_v29 = vpop.f32.mrb[21].mxu0  ;;  %v2283_v37 = vpop.f32.mrb[22].mxu1 }
 0x222   :  { %v3143_v38 = vadd.f32 %v2800_v29, %v2281_v33  ;;  %v2802_v39 = vpop.f32.mrb[22].mxu0  ;;  %v2285_v40 = vpop.f32.mrb[23].mxu1 }
 0x223   :  { %2908 = vst [vmem:[%s5576_s3 + $0xa0] sm:$0xff] %v3142_v36  ;;  %v3144_v41 = vadd.f32 %v2802_v39, %v2283_v37  ;;  %v2804_v42 = vpop.f32.mrb[23].mxu0 }
 0x224   :  { %2909 = vst.msk [vmem:[%s5576_s3 + $0xa8] sm:$0xff] %vm2888_vm1, %v3143_v38  ;;  %v3145_v43 = vadd.f32 %v2804_v42, %v2285_v40 }
 0x225   :  { %2910 = vst [vmem:[%s5576_s3 + $0xb0] sm:$0xff] %v3144_v41 }
 0x226   :  { %2911 = vst.msk [vmem:[%s5576_s3 + $0xb8] sm:$0xff] %vm2888_vm1, %v3145_v43 }
 0x227   :  { %v2289_v44 = vpop.f32.mrb[24].mxu1 }
 0x228   :  { %v2808_v3 = vpop.f32.mrb[24].mxu0  ;;  %v2291_v19 = vpop.f32.mrb[25].mxu1 }
 0x229   :  { %v3146_v47 = vadd.f32 %v2808_v3, %v2289_v44  ;;  %v2810_v48 = vpop.f32.mrb[25].mxu0  ;;  %v2293_v51 = vpop.f32.mrb[26].mxu1 }
 0x22a   :  { %v3147_v45 = vadd.f32 %v2810_v48, %v2291_v19  ;;  %v2812_v46 = vpop.f32.mrb[26].mxu0  ;;  %v2295_v52 = vpop.f32.mrb[27].mxu1 }
 0x22b   :  { %2912 = vst [vmem:[%s5576_s3 + $0xc0] sm:$0xff] %v3146_v47  ;;  %v3148_v53 = vadd.f32 %v2812_v46, %v2293_v51  ;;  %v2814_v54 = vpop.f32.mrb[27].mxu0 }
 0x22c   :  { %2913 = vst.msk [vmem:[%s5576_s3 + $0xc8] sm:$0xff] %vm2888_vm1, %v3147_v45  ;;  %v3149_v55 = vadd.f32 %v2814_v54, %v2295_v52 }
 0x22d   :  { %2914 = vst [vmem:[%s5576_s3 + $0xd0] sm:$0xff] %v3148_v53 }
 0x22e   :  { %2915 = vst.msk [vmem:[%s5576_s3 + $0xd8] sm:$0xff] %vm2888_vm1, %v3149_v55 }
 0x22f   :  { %v2299_v49 = vpop.f32.mrb[28].mxu1 }
 0x230   :  { %v2818_v50 = vpop.f32.mrb[28].mxu0  ;;  %v2301_v56 = vpop.f32.mrb[29].mxu1 }
 0x231   :  { %v3150_v57 = vadd.f32 %v2818_v50, %v2299_v49  ;;  %v2820_v58 = vpop.f32.mrb[29].mxu0  ;;  %v2303_v60 = vpop.f32.mrb[30].mxu1 }
 0x232   :  { %v3151_v62 = vadd.f32 %v2820_v58, %v2301_v56  ;;  %v2822_v23 = vpop.f32.mrb[30].mxu0  ;;  %v2305_v7 = vpop.f32.mrb[31].mxu1 }
 0x233   :  { %2916 = vst [vmem:[%s5576_s3 + $0xe0] sm:$0xff] %v3150_v57  ;;  %v3152_v61 = vadd.f32 %v2822_v23, %v2303_v60  ;;  %v2824_v0 = vpop.f32.mrb[31].mxu0 }
 0x234   :  { %2917 = vst.msk [vmem:[%s5576_s3 + $0xe8] sm:$0xff] %vm2888_vm1, %v3151_v62  ;;  %v3153_v9 = vadd.f32 %v2824_v0, %v2305_v7 }
 0x235   :  { %2918 = vst [vmem:[%s5576_s3 + $0xf0] sm:$0xff] %v3152_v61 }
 0x236   :  { %2919 = vst.msk [vmem:[%s5576_s3 + $0xf8] sm:$0xff] %vm2888_vm1, %v3153_v9 }
 0x237   :  { %v2309_v1 = vpop.f32.mrb[32].mxu1 }
 0x238   :  { %v2828_v2 = vpop.f32.mrb[32].mxu0  ;;  %v2311_v4 = vpop.f32.mrb[33].mxu1 }
 0x239   :  { %v3154_v5 = vadd.f32 %v2828_v2, %v2309_v1  ;;  %v2830_v10 = vpop.f32.mrb[33].mxu0  ;;  %v2313_v11 = vpop.f32.mrb[34].mxu1 }
 0x23a   :  { %v3155_v8 = vadd.f32 %v2830_v10, %v2311_v4  ;;  %v2832_v13 = vpop.f32.mrb[34].mxu0  ;;  %v2315_v14 = vpop.f32.mrb[35].mxu1 }
 0x23b   :  { %2920 = vst [vmem:[%s5576_s3 + $0x100] sm:$0xff] %v3154_v5  ;;  %v3156_v15 = vadd.f32 %v2832_v13, %v2313_v11  ;;  %v2834_v16 = vpop.f32.mrb[35].mxu0 }
 0x23c   :  { %2921 = vst.msk [vmem:[%s5576_s3 + $0x108] sm:$0xff] %vm2888_vm1, %v3155_v8  ;;  %v3157_v17 = vadd.f32 %v2834_v16, %v2315_v14 }
 0x23d   :  { %2922 = vst [vmem:[%s5576_s3 + $0x110] sm:$0xff] %v3156_v15 }
 0x23e   :  { %2923 = vst.msk [vmem:[%s5576_s3 + $0x118] sm:$0xff] %vm2888_vm1, %v3157_v17 }
 0x23f   :  { %v2319_v18 = vpop.f32.mrb[36].mxu1 }
 0x240   :  { %v2838_v20 = vpop.f32.mrb[36].mxu0  ;;  %v2321_v21 = vpop.f32.mrb[37].mxu1 }
 0x241   :  { %v3158_v22 = vadd.f32 %v2838_v20, %v2319_v18  ;;  %v2840_v26 = vpop.f32.mrb[37].mxu0  ;;  %v2323_v27 = vpop.f32.mrb[38].mxu1 }
 0x242   :  { %v3159_v12 = vadd.f32 %v2840_v26, %v2321_v21  ;;  %v2842_v30 = vpop.f32.mrb[38].mxu0  ;;  %v2325_v31 = vpop.f32.mrb[39].mxu1 }
 0x243   :  { %2924 = vst [vmem:[%s5576_s3 + $0x120] sm:$0xff] %v3158_v22  ;;  %v3160_v24 = vadd.f32 %v2842_v30, %v2323_v27  ;;  %v2844_v25 = vpop.f32.mrb[39].mxu0 }
 0x244   :  { %2925 = vst.msk [vmem:[%s5576_s3 + $0x128] sm:$0xff] %vm2888_vm1, %v3159_v12  ;;  %v3161_v32 = vadd.f32 %v2844_v25, %v2325_v31 }
 0x245   :  { %2926 = vst [vmem:[%s5576_s3 + $0x130] sm:$0xff] %v3160_v24 }
 0x246   :  { %2927 = vst.msk [vmem:[%s5576_s3 + $0x138] sm:$0xff] %vm2888_vm1, %v3161_v32 }
 0x247   :  { %v2329_v34 = vpop.f32.mrb[40].mxu1 }
 0x248   :  { %v2848_v35 = vpop.f32.mrb[40].mxu0  ;;  %v2331_v28 = vpop.f32.mrb[41].mxu1 }
 0x249   :  { %v3162_v59 = vadd.f32 %v2848_v35, %v2329_v34  ;;  %v2850_v6 = vpop.f32.mrb[41].mxu0  ;;  %v2333_v63 = vpop.f32.mrb[42].mxu1 }
 0x24a   :  { %v3163_v33 = vadd.f32 %v2850_v6, %v2331_v28  ;;  %v2852_v36 = vpop.f32.mrb[42].mxu0  ;;  %v2335_v29 = vpop.f32.mrb[43].mxu1 }
 0x24b   :  { %2928 = vst [vmem:[%s5576_s3 + $0x140] sm:$0xff] %v3162_v59  ;;  %v3164_v37 = vadd.f32 %v2852_v36, %v2333_v63  ;;  %v2854_v38 = vpop.f32.mrb[43].mxu0 }
 0x24c   :  { %2929 = vst.msk [vmem:[%s5576_s3 + $0x148] sm:$0xff] %vm2888_vm1, %v3163_v33  ;;  %v3165_v39 = vadd.f32 %v2854_v38, %v2335_v29 }
 0x24d   :  { %2930 = vst [vmem:[%s5576_s3 + $0x150] sm:$0xff] %v3164_v37 }
 0x24e   :  { %2931 = vst.msk [vmem:[%s5576_s3 + $0x158] sm:$0xff] %vm2888_vm1, %v3165_v39 }
 0x24f   :  { %v2339_v40 = vpop.f32.mrb[44].mxu1 }
 0x250   :  { %v2858_v41 = vpop.f32.mrb[44].mxu0  ;;  %v2341_v42 = vpop.f32.mrb[45].mxu1 }
 0x251   :  { %v3166_v43 = vadd.f32 %v2858_v41, %v2339_v40  ;;  %v2860_v44 = vpop.f32.mrb[45].mxu0  ;;  %v2343_v3 = vpop.f32.mrb[46].mxu1 }
 0x252   :  { %v3167_v19 = vadd.f32 %v2860_v44, %v2341_v42  ;;  %v2862_v47 = vpop.f32.mrb[46].mxu0  ;;  %v2345_v48 = vpop.f32.mrb[47].mxu1 }
 0x253   :  { %2932 = vst [vmem:[%s5576_s3 + $0x160] sm:$0xff] %v3166_v43  ;;  %v3168_v51 = vadd.f32 %v2862_v47, %v2343_v3  ;;  %v2864_v45 = vpop.f32.mrb[47].mxu0 }
 0x254   :  { %2933 = vst.msk [vmem:[%s5576_s3 + $0x168] sm:$0xff] %vm2888_vm1, %v3167_v19  ;;  %v3169_v46 = vadd.f32 %v2864_v45, %v2345_v48 }
 0x255   :  { %2934 = vst [vmem:[%s5576_s3 + $0x170] sm:$0xff] %v3168_v51 }
 0x256   :  { %2935 = vst.msk [vmem:[%s5576_s3 + $0x178] sm:$0xff] %vm2888_vm1, %v3169_v46 }
 0x257   :  { %v2349_v52 = vpop.f32.mrb[48].mxu1 }
 0x258   :  { %v2868_v53 = vpop.f32.mrb[48].mxu0  ;;  %v2351_v54 = vpop.f32.mrb[49].mxu1 }
 0x259   :  { %v3170_v55 = vadd.f32 %v2868_v53, %v2349_v52  ;;  %v2870_v49 = vpop.f32.mrb[49].mxu0  ;;  %v2353_v50 = vpop.f32.mrb[50].mxu1 }
 0x25a   :  { %v3171_v56 = vadd.f32 %v2870_v49, %v2351_v54  ;;  %v2872_v57 = vpop.f32.mrb[50].mxu0  ;;  %v2355_v58 = vpop.f32.mrb[51].mxu1 }
 0x25b   :  { %2936 = vst [vmem:[%s5576_s3 + $0x180] sm:$0xff] %v3170_v55  ;;  %v3172_v60 = vadd.f32 %v2872_v57, %v2353_v50  ;;  %v2874_v62 = vpop.f32.mrb[51].mxu0 }
 0x25c   :  { %2937 = vst.msk [vmem:[%s5576_s3 + $0x188] sm:$0xff] %vm2888_vm1, %v3171_v56  ;;  %v3173_v23 = vadd.f32 %v2874_v62, %v2355_v58 }
 0x25d   :  { %2938 = vst [vmem:[%s5576_s3 + $0x190] sm:$0xff] %v3172_v60 }
 0x25e   :  { %2939 = vst.msk [vmem:[%s5576_s3 + $0x198] sm:$0xff] %vm2888_vm1, %v3173_v23 }
 0x25f   :  { %v2359_v7 = vpop.f32.mrb[52].mxu1 }
 0x260   :  { %v2878_v61 = vpop.f32.mrb[52].mxu0  ;;  %v2361_v0 = vpop.f32.mrb[53].mxu1 }
 0x261   :  { %v3174_v9 = vadd.f32 %v2878_v61, %v2359_v7  ;;  %v2880_v1 = vpop.f32.mrb[53].mxu0  ;;  %v2363_v2 = vpop.f32.mrb[54].mxu1 }
 0x262   :  { %v3175_v4 = vadd.f32 %v2880_v1, %v2361_v0  ;;  %v2882_v5 = vpop.f32.mrb[54].mxu0  ;;  %v2365_v10 = vpop.f32.mrb[55].mxu1 }
 0x263   :  { %2940 = vst [vmem:[%s5576_s3 + $0x1a0] sm:$0xff] %v3174_v9  ;;  %v3176_v11 = vadd.f32 %v2882_v5, %v2363_v2  ;;  %v2884_v8 = vpop.f32.mrb[55].mxu0 }
 0x264   :  { %2941 = vst.msk [vmem:[%s5576_s3 + $0x1a8] sm:$0xff] %vm2888_vm1, %v3175_v4  ;;  %v3177_v13 = vadd.f32 %v2884_v8, %v2365_v10 }
 0x265   :  { %2942 = vst [vmem:[%s5576_s3 + $0x1b0] sm:$0xff] %v3176_v11 }
 0x266   :  { %2943 = vst.msk [vmem:[%s5576_s3 + $0x1b8] sm:$0xff] %vm2888_vm1, %v3177_v13 }

</bundles_post_ra>
